<compile_context>
chip_gen: v6e
topology: v6e:2x2x1
jax: 0.10.0
libtpu: 0.0.40
codegen_flags: <defaults>
</compile_context>

<pallas_src>
import functools

import jax
import jax.numpy as jnp
from jax.experimental import pallas as pl
from jax.experimental.pallas import tpu as pltpu

BN_EPS = 1e-5
MIB = 1024 * 1024
# Conservative per-TensorCore VMEM floor across generations (v7x: 64 MiB;
# v5e / v6e have 128 MiB).  All budgets below derive from this floor.
VMEM_FLOOR_BYTES = 64 * MIB
VMEM_USABLE_BYTES = (3 * VMEM_FLOOR_BYTES) // 4


def _pick_tile_m(m, bytes_per_col, budget=8 * MIB):
    """Largest lane tile (multiple of 128) dividing m whose double-buffered
    streamed blocks fit `budget` bytes.  Bigger tiles first: per-grid-step
    overhead is ~0.35us and small tiles sit well below the HBM roofline."""
    fallback = None
    for cand in (4096, 2048, 1024, 512, 256, 128):
        if m % cand == 0:
            if fallback is None:
                fallback = cand
            if 2 * cand * bytes_per_col <= budget:
                return cand
    return fallback if fallback is not None else m


def _vmem_limit(resident_bytes, streamed_bytes):
    """Right-sized vmem_limit_bytes: working set + double-buffer slack +
    headroom, capped at 75% of the smallest per-TC VMEM (v7x: 64 MiB)."""
    need = resident_bytes + 2 * streamed_bytes + 2 * MIB
    return int(min(max(need, 16 * MIB), VMEM_USABLE_BYTES))


# -----------------------------------------------------------------------------
# Pallas kernels
# -----------------------------------------------------------------------------
def _conv_bn_prelu_fused_kernel(w_ref, p_ref, gamma_ref, beta_ref, alpha_ref,
                                o_ref, y_sc, mean_sc, m2_sc, *, tile_m, total_m):
    """Fused conv matmul + batch stats + normalize + PReLU.

    Per grid step: one (C, K) @ (K, tile_m) MXU matmul (bf16 in, f32 acc),
    result stored into the resident (C, M) f32 VMEM scratch and folded into
    running mean / M2 with Chan's parallel-variance combine.  On the last
    step the whole scratch is normalized + PReLU'd in f32 and written once as
    a lane-dense bf16 block, avoiding any f32 activation round-trip to HBM.
    """
    i = pl.program_id(0)

    y = jnp.dot(w_ref[...], p_ref[...], preferred_element_type=jnp.float32)
    if tile_m == total_m:
        y_sc[...] = y
    else:
        col = pl.multiple_of(i * tile_m, tile_m)
        y_sc[:, pl.ds(col, tile_m)] = y

    t_mean = jnp.mean(y, axis=-1, keepdims=True)                # (C, 1)
    d = y - t_mean
    t_m2 = jnp.sum(d * d, axis=-1, keepdims=True)               # (C, 1)

    @pl.when(i == 0)
    def _():
        mean_sc[...] = t_mean
        m2_sc[...] = t_m2

    @pl.when(i > 0)
    def _():
        n_a = (i * tile_m).astype(jnp.float32)   # samples combined so far
        n_b = jnp.float32(tile_m)
        n_ab = n_a + n_b
        delta = t_mean - mean_sc[...]
        mean_sc[...] = mean_sc[...] + delta * (n_b / n_ab)
        m2_sc[...] = m2_sc[...] + t_m2 + (delta * delta) * (n_a * n_b / n_ab)

    @pl.when(i == pl.num_programs(0) - 1)
    def _():
        mean = mean_sc[...]
        var = m2_sc[...] * (1.0 / total_m)                      # biased var
        inv_std = jax.lax.rsqrt(var + BN_EPS)
        scale = inv_std * gamma_ref[...]                        # (C, 1)
        shift = beta_ref[...] - mean * scale
        alpha = alpha_ref[0]
        y_all = y_sc[...]
        y_bn = y_all * scale + shift
        o_ref[...] = jnp.where(y_bn >= 0.0, y_bn, alpha * y_bn).astype(o_ref.dtype)


def _conv_stats_kernel(w_ref, p_ref, y_ref, mean_ref, var_ref,
                       mean_sc, m2_sc, *, tile_m, total_m):
    """Two-pass fallback, pass 1: matmul + global BN stats; y emitted bf16."""
    i = pl.program_id(0)

    y = jnp.dot(w_ref[...], p_ref[...], preferred_element_type=jnp.float32)
    y_ref[...] = y.astype(y_ref.dtype)

    t_mean = jnp.mean(y, axis=-1, keepdims=True)
    d = y - t_mean
    t_m2 = jnp.sum(d * d, axis=-1, keepdims=True)

    @pl.when(i == 0)
    def _():
        mean_sc[...] = t_mean
        m2_sc[...] = t_m2

    @pl.when(i > 0)
    def _():
        n_a = (i * tile_m).astype(jnp.float32)
        n_b = jnp.float32(tile_m)
        n_ab = n_a + n_b
        delta = t_mean - mean_sc[...]
        mean_sc[...] = mean_sc[...] + delta * (n_b / n_ab)
        m2_sc[...] = m2_sc[...] + t_m2 + (delta * delta) * (n_a * n_b / n_ab)

    @pl.when(i == pl.num_programs(0) - 1)
    def _():
        mean_ref[...] = mean_sc[...]
        var_ref[...] = m2_sc[...] * (1.0 / total_m)


def _bn_prelu_kernel(y_ref, mean_ref, var_ref, gamma_ref, beta_ref,
                     alpha_ref, o_ref):
    """Two-pass fallback, pass 2: normalize + PReLU (f32 math, bf16 in/out)."""
    y = y_ref[...].astype(jnp.float32)
    inv_std = jax.lax.rsqrt(var_ref[...] + BN_EPS)
    scale = inv_std * gamma_ref[...]
    shift = beta_ref[...] - mean_ref[...] * scale
    y_bn = y * scale + shift
    alpha = alpha_ref[0]
    o_ref[...] = jnp.where(y_bn >= 0.0, y_bn, alpha * y_bn).astype(o_ref.dtype)


def _maxpool_kernel(win_ref, o_ref):
    """One-shot 27-tap max over the (T, C, tile_m) window block."""
    o_ref[...] = jnp.max(win_ref[...].astype(jnp.float32), axis=0)


# -----------------------------------------------------------------------------
# pallas_call wrappers
# -----------------------------------------------------------------------------
def _conv_bn_prelu_fused(patches, w, gamma, beta, alpha, tile_m, n_tiles):
    K, M = patches.shape
    C = w.shape[0]
    limit = _vmem_limit(resident_bytes=C * M * 6 + C * K * 2,
                        streamed_bytes=K * tile_m * 2)
    return pl.pallas_call(
        functools.partial(_conv_bn_prelu_fused_kernel, tile_m=tile_m, total_m=M),
        out_shape=jax.ShapeDtypeStruct((C, M), jnp.bfloat16),
        grid=(n_tiles,),
        in_specs=[
            pl.BlockSpec((C, K), lambda i: (0, 0)),              # weights: resident
            pl.BlockSpec((K, tile_m), lambda i: (0, i)),          # patches: streamed
            pl.BlockSpec((C, 1), lambda i: (0, 0)),               # gamma
            pl.BlockSpec((C, 1), lambda i: (0, 0)),               # beta
            pl.BlockSpec(memory_space=pltpu.MemorySpace.SMEM),    # PReLU alpha
        ],
        out_specs=pl.BlockSpec((C, M), lambda i: (0, 0)),          # resident, written once
        scratch_shapes=[
            pltpu.VMEM((C, M), jnp.float32),    # pre-BN activations, resident
            pltpu.VMEM((C, 1), jnp.float32),    # running mean
            pltpu.VMEM((C, 1), jnp.float32),    # running M2
        ],
        compiler_params=pltpu.CompilerParams(
            dimension_semantics=("arbitrary",),    # stats accumulate over M tiles
            vmem_limit_bytes=limit),
        cost_estimate=pl.CostEstimate(
            flops=2 * C * K * M + 6 * C * M, transcendentals=C,
            bytes_accessed=K * M * 2 + C * K * 2 + C * M * 2),
    )(w, patches, gamma, beta, alpha)


def _conv_bn_prelu_two_pass(patches, w, gamma, beta, alpha, tile_m, n_tiles):
    # Fallback when the resident (C, M) scratch would not fit VMEM.
    # TODO(synk): on v7x, emit per-tile partial (mean, M2) with a "parallel"
    # grid here and Chan-combine afterwards so pass 1 shards across both TCs.
    K, M = patches.shape
    C = w.shape[0]

    limit1 = _vmem_limit(resident_bytes=C * K * 2 + 4 * C * 4,
                         streamed_bytes=(K + C) * tile_m * 2)
    y, mean, var = pl.pallas_call(
        functools.partial(_conv_stats_kernel, tile_m=tile_m, total_m=M),
        out_shape=(
            jax.ShapeDtypeStruct((C, M), jnp.bfloat16),
            jax.ShapeDtypeStruct((C, 1), jnp.float32),
            jax.ShapeDtypeStruct((C, 1), jnp.float32),
        ),
        grid=(n_tiles,),
        in_specs=[
            pl.BlockSpec((C, K), lambda i: (0, 0)),
            pl.BlockSpec((K, tile_m), lambda i: (0, i)),
        ],
        out_specs=(
            pl.BlockSpec((C, tile_m), lambda i: (0, i)),
            pl.BlockSpec((C, 1), lambda i: (0, 0)),
            pl.BlockSpec((C, 1), lambda i: (0, 0)),
        ),
        scratch_shapes=[
            pltpu.VMEM((C, 1), jnp.float32),
            pltpu.VMEM((C, 1), jnp.float32),
        ],
        compiler_params=pltpu.CompilerParams(
            dimension_semantics=("arbitrary",),
            vmem_limit_bytes=limit1),
        cost_estimate=pl.CostEstimate(
            flops=2 * C * K * M, transcendentals=0,
            bytes_accessed=K * M * 2 + C * K * 2 + C * M * 2),
    )(w, patches)

    limit2 = _vmem_limit(resident_bytes=4 * C * 4,
                         streamed_bytes=2 * C * tile_m * 2)
    out = pl.pallas_call(
        _bn_prelu_kernel,
        out_shape=jax.ShapeDtypeStruct((C, M), jnp.bfloat16),
        grid=(n_tiles,),
        in_specs=[
            pl.BlockSpec((C, tile_m), lambda i: (0, i)),
            pl.BlockSpec((C, 1), lambda i: (0, 0)),
            pl.BlockSpec((C, 1), lambda i: (0, 0)),
            pl.BlockSpec((C, 1), lambda i: (0, 0)),
            pl.BlockSpec((C, 1), lambda i: (0, 0)),
            pl.BlockSpec(memory_space=pltpu.MemorySpace.SMEM),
        ],
        out_specs=pl.BlockSpec((C, tile_m), lambda i: (0, i)),
        compiler_params=pltpu.CompilerParams(
            dimension_semantics=("parallel",),
            vmem_limit_bytes=limit2),
        cost_estimate=pl.CostEstimate(
            flops=5 * C * M, transcendentals=C * n_tiles,
            bytes_accessed=2 * C * M * 2),
    )(y, mean, var, gamma, beta, alpha)
    return out


def conv_bn_prelu(patches, w, gamma, beta, alpha):
    """patches: (K, M) bf16, w: (C, K) bf16 -> fused conv+BN+PReLU, (C, M) bf16.

    Uses the single-pass fused kernel (pre-BN activations resident in VMEM)
    when the working set fits the v7x 64 MiB per-TC budget; otherwise falls
    back to the two-pass (stats, then normalize) pipeline with bf16 y.
    """
    K, M = patches.shape
    C = w.shape[0]
    tile_m = _pick_tile_m(M, bytes_per_col=2 * K)
    n_tiles = M // tile_m if M % tile_m == 0 else 1
    if M % tile_m != 0:
        tile_m = M

    resident = C * M * 6 + C * K * 2          # y scratch f32 + bf16 out + weights
    streamed = 2 * K * tile_m * 2             # double-buffered bf16 patch tile
    if resident + streamed + 2 * MIB <= VMEM_USABLE_BYTES:
        return _conv_bn_prelu_fused(patches, w, gamma, beta, alpha, tile_m, n_tiles)
    return _conv_bn_prelu_two_pass(patches, w, gamma, beta, alpha, tile_m, n_tiles)


def maxpool_reduce(windows):
    """windows: (T, C, M) bf16 -> (C, M) f32; one jnp.max(axis=0) per M-tile."""
    T, C, M = windows.shape
    bytes_per_col = T * C * 2 + C * 4
    tile_m = _pick_tile_m(M, bytes_per_col=bytes_per_col)
    if M % tile_m != 0:
        tile_m = M
    n_tiles = M // tile_m
    limit = _vmem_limit(resident_bytes=0, streamed_bytes=bytes_per_col * tile_m)
    return pl.pallas_call(
        _maxpool_kernel,
        out_shape=jax.ShapeDtypeStruct((C, M), jnp.float32),
        grid=(n_tiles,),
        in_specs=[pl.BlockSpec((T, C, tile_m), lambda m: (0, 0, m))],
        out_specs=pl.BlockSpec((C, tile_m), lambda m: (0, m)),
        compiler_params=pltpu.CompilerParams(
            dimension_semantics=("parallel",),
            vmem_limit_bytes=limit),
        cost_estimate=pl.CostEstimate(
            flops=T * C * M, transcendentals=0,
            bytes_accessed=T * C * M * 2 + C * M * 4),
    )(windows)


# -----------------------------------------------------------------------------
# Plain-JAX glue (layout plumbing only; no hot-path compute)
# -----------------------------------------------------------------------------
def _im2col_cf(x_cf, k, stride, pad, dtype):
    """x_cf: (Cin, N, D, H, W) -> patches (k^3*Cin, N*Do*Ho*Wo) in `dtype`.

    K ordering is (kd, kh, kw, cin), matching weight.reshape(C, -1) of a
    (Cout, kd, kh, kw, Cin) weight tensor.

    TODO(synk): for production spatial sizes (>=128 lanes along W), replace
    this HBM im2col with an in-kernel halo'd DMA of a (Cin, spatial+halo)
    tile and build the (K, tile_m) slab from pl.ds shifted views, removing
    the k^3-fold HBM amplification.  (K is also left unpadded here; padding
    K to the MXU contraction granularity only adds HBM traffic while the
    pipeline stays memory-bound.)
    """
    C, N, D, H, W = x_cf.shape
    xp = jnp.pad(x_cf.astype(dtype),
                 ((0, 0), (0, 0), (pad, pad), (pad, pad), (pad, pad)))
    Do = (D + 2 * pad - k) // stride + 1
    Ho = (H + 2 * pad - k) // stride + 1
    Wo = (W + 2 * pad - k) // stride + 1
    cols = []
    for kd in range(k):
        for kh in range(k):
            for kw in range(k):
                cols.append(xp[:, :, kd:kd + stride * Do:stride,
                                     kh:kh + stride * Ho:stride,
                                     kw:kw + stride * Wo:stride])
    col = jnp.stack(cols, axis=0)                 # (k^3, Cin, N, Do, Ho, Wo)
    return col.reshape(k * k * k * C, N * Do * Ho * Wo), (N, Do, Ho, Wo)


def _maxpool_windows_cf(x_cf, k, stride, pad):
    """x_cf: (C, N, D, H, W) bf16 -> (k^3, C, N*Do*Ho*Wo) shifted strided views.

    TODO(synk): fold the 27 taps into the conv2 fused kernel (pool straight
    from the VMEM-resident activations) once a spatially-tiled layout with
    >=128 lanes along W makes the in-kernel strided views lane-friendly.
    """
    C, N, D, H, W = x_cf.shape
    xp = jnp.pad(x_cf, ((0, 0), (0, 0), (pad, pad), (pad, pad), (pad, pad)),
                 constant_values=-jnp.inf)
    Do = (D + 2 * pad - k) // stride + 1
    Ho = (H + 2 * pad - k) // stride + 1
    Wo = (W + 2 * pad - k) // stride + 1
    wins = []
    for kd in range(k):
        for kh in range(k):
            for kw in range(k):
                wins.append(xp[:, :, kd:kd + stride * Do:stride,
                                     kh:kh + stride * Ho:stride,
                                     kw:kw + stride * Wo:stride])
    stacked = jnp.stack(wins, axis=0)             # (k^3, C, N, Do, Ho, Wo)
    return stacked.reshape(k * k * k, C, N * Do * Ho * Wo), (N, Do, Ho, Wo)


def init_params(key, in_channels=1, inplanes=8):
    k1, k2 = jax.random.split(key)
    # Conv weights generated in (Cout, kd, kh, kw, Cin) order; real PyTorch
    # weights ((Cout, Cin, kd, kh, kw)) need transpose(0, 2, 3, 4, 1) before
    # the reshape below.  Reshape + bf16 cast is hoisted here (one-time prep).
    w1 = 0.1 * jax.random.normal(k1, (inplanes, 7, 7, 7, in_channels), jnp.float32)
    w2 = 0.1 * jax.random.normal(k2, (inplanes, 3, 3, 3, inplanes), jnp.float32)
    return {
        "w1": w1.reshape(inplanes, -1).astype(jnp.bfloat16),      # (C, 343*Cin)
        "w2": w2.reshape(inplanes, -1).astype(jnp.bfloat16),      # (C, 27*C)
        # BatchNorm3d defaults (gamma=1, beta=0), stored per-channel (C, 1)
        "gamma1": jnp.ones((inplanes, 1), jnp.float32),
        "beta1": jnp.zeros((inplanes, 1), jnp.float32),
        "gamma2": jnp.ones((inplanes, 1), jnp.float32),
        "beta2": jnp.zeros((inplanes, 1), jnp.float32),
        # PReLU defaults (single shared parameter, init 0.25), SMEM scalars
        "alpha1": jnp.full((1,), 0.25, jnp.float32),
        "alpha2": jnp.full((1,), 0.25, jnp.float32),
    }


@jax.jit
def extract_feature_forward(x_ncdhw, params):
    """x_ncdhw: (N, Cin, D, H, W) float32 -> (N, C, Do, Ho, Wo) float32."""
    C = params["w1"].shape[0]

    # NCDHW -> channels-first (Cin, N, D, H, W).
    x_cf = jnp.transpose(x_ncdhw, (1, 0, 2, 3, 4))

    # conv1 (k=7, s=2, p=3) + bn1 (training-mode batch stats) + prelu1.
    p1, (N, D1, H1, W1) = _im2col_cf(x_cf, k=7, stride=2, pad=3,
                                     dtype=jnp.bfloat16)
    y1 = conv_bn_prelu(p1, params["w1"], params["gamma1"], params["beta1"],
                       params["alpha1"])                         # (C, M1) bf16

    # conv2 (k=3, s=1, p=1) + bn2 + prelu2.
    p2, (N, D2, H2, W2) = _im2col_cf(y1.reshape(C, N, D1, H1, W1),
                                     k=3, stride=1, pad=1, dtype=jnp.bfloat16)
    y2 = conv_bn_prelu(p2, params["w2"], params["gamma2"], params["beta2"],
                       params["alpha2"])                         # (C, M2) bf16

    # maxpool (k=3, s=2, p=1): one-shot 27-tap reduction per lane tile.
    wins, (N, D3, H3, W3) = _maxpool_windows_cf(
        y2.reshape(C, N, D2, H2, W2), k=3, stride=2, pad=1)
    y3 = maxpool_reduce(wins).reshape(C, N, D3, H3, W3)

    # channels-first -> NCDHW (PyTorch output convention).
    return jnp.transpose(y3, (1, 0, 2, 3, 4))


# -----------------------------------------------------------------------------
# Main
# -----------------------------------------------------------------------------
if __name__ == "__main__":
    key = jax.random.PRNGKey(0)
    kx, kp = jax.random.split(key)

    N, Cin, D, H, W = 2, 1, 16, 16, 16
    inplanes = 8  # small stand-in for the module's default inplanes=32

    x = jax.random.normal(kx, (N, Cin, D, H, W), jnp.float32)
    params = init_params(kp, in_channels=Cin, inplanes=inplanes)

    out = extract_feature_forward(x, params)
    out = jax.block_until_ready(out)

    expected_shape = (N, inplanes, 4, 4, 4)
    assert out.shape == expected_shape, (out.shape, expected_shape)
    assert bool(jnp.all(jnp.isfinite(out)))
    print("KERNEL_OK")
</pallas_src>

<mosaic_0001>
module attributes {stable_mosaic.version = 11 : i64} {
  func.func @_conv_bn_prelu_fused_kernel(%arg0: i32, %arg1: memref<8x343xbf16, #tpu.memory_space<vmem>>, %arg2: memref<343x1024xbf16, #tpu.memory_space<vmem>>, %arg3: memref<8x1xf32, #tpu.memory_space<vmem>>, %arg4: memref<8x1xf32, #tpu.memory_space<vmem>>, %arg5: memref<1xf32, #tpu.memory_space<smem>>, %arg6: memref<8x1024xbf16, #tpu.memory_space<vmem>>, %arg7: memref<8x1024xf32, #tpu.memory_space<vmem>>, %arg8: memref<8x1xf32, #tpu.memory_space<vmem>>, %arg9: memref<8x1xf32, #tpu.memory_space<vmem>>) attributes {dimension_semantics = [#tpu.dimension_semantics<arbitrary>], iteration_bounds = array<i64: 1>, scalar_prefetch = 0 : i64, scratch_operands = 3 : i64, tpu.core_type = #tpu.core_type<tc>, window_params = [{pipeline_mode = #tpu.pipeline_mode<synchronous>, transform_indices = @transform_0, window_bounds = array<i64: 8, 343>}, {transform_indices = @transform_1, window_bounds = array<i64: 343, 1024>}, {pipeline_mode = #tpu.pipeline_mode<synchronous>, transform_indices = @transform_2, window_bounds = array<i64: 8, 1>}, {pipeline_mode = #tpu.pipeline_mode<synchronous>, transform_indices = @transform_3, window_bounds = array<i64: 8, 1>}, {transform_indices = @transform_4, window_bounds = array<i64: 1>}, {pipeline_mode = #tpu.pipeline_mode<synchronous>, transform_indices = @transform_5, window_bounds = array<i64: 8, 1024>}]} {
    %c0 = arith.constant 0 : index
    %c0_0 = arith.constant 0 : index
    %0 = vector.load %arg1[%c0, %c0_0] : memref<8x343xbf16, #tpu.memory_space<vmem>>, vector<8x343xbf16>
    %c0_1 = arith.constant 0 : index
    %c0_2 = arith.constant 0 : index
    %1 = vector.load %arg2[%c0_1, %c0_2] : memref<343x1024xbf16, #tpu.memory_space<vmem>>, vector<343x1024xbf16>
    %cst = arith.constant dense<0.000000e+00> : vector<8x1024xf32>
    %2 = tpu.matmul %0, %1, %cst {dimension_numbers = #tpu.dot_dimension_numbers<[1], [0], [0], [1], [0, 0, 1, 1], [], []>} : vector<8x343xbf16>, vector<343x1024xbf16>, vector<8x1024xf32> -> vector<8x1024xf32>
    %c0_3 = arith.constant 0 : index
    %c0_4 = arith.constant 0 : index
    %3 = vector.load %arg7[%c0_3, %c0_4] : memref<8x1024xf32, #tpu.memory_space<vmem>>, vector<8x1024xf32>
    tpu.vector_store %arg7[%c0_3, %c0_4], %2 {strides = array<i32>} : memref<8x1024xf32, #tpu.memory_space<vmem>>, vector<8x1024xf32>,
    %cst_5 = arith.constant dense<0.000000e+00> : vector<8xf32>
    %4 = vector.multi_reduction <add>, %2, %cst_5 [1] : vector<8x1024xf32> to vector<8xf32>
    %5 = vector.shape_cast %4 : vector<8xf32> to vector<8x1xf32>
    %cst_6 = arith.constant 1.024000e+03 : f32
    %6 = vector.broadcast %cst_6 : f32 to vector<8x1xf32>
    %7 = arith.divf %5, %6 : vector<8x1xf32>
    %8 = vector.broadcast %7 : vector<8x1xf32> to vector<8x1024xf32>
    %9 = arith.subf %2, %8 : vector<8x1024xf32>
    %10 = arith.mulf %9, %9 : vector<8x1024xf32>
    %cst_7 = arith.constant dense<0.000000e+00> : vector<8xf32>
    %11 = vector.multi_reduction <add>, %10, %cst_7 [1] : vector<8x1024xf32> to vector<8xf32>
    %12 = vector.shape_cast %11 : vector<8xf32> to vector<8x1xf32>
    %c0_i32 = arith.constant 0 : i32
    %13 = arith.cmpi eq, %arg0, %c0_i32 : i32
    %14 = arith.extui %13 : i1 to i32
    %c0_i32_8 = arith.constant 0 : i32
    %15 = arith.cmpi ne, %14, %c0_i32_8 : i32
    scf.if %15 {
      %c0_13 = arith.constant 0 : index
      %c0_14 = arith.constant 0 : index
      %22 = vector.load %arg8[%c0_13, %c0_14] : memref<8x1xf32, #tpu.memory_space<vmem>>, vector<8x1xf32>
      tpu.vector_store %arg8[%c0_13, %c0_14], %7 {strides = array<i32>} : memref<8x1xf32, #tpu.memory_space<vmem>>, vector<8x1xf32>,
      %c0_15 = arith.constant 0 : index
      %c0_16 = arith.constant 0 : index
      %23 = vector.load %arg9[%c0_15, %c0_16] : memref<8x1xf32, #tpu.memory_space<vmem>>, vector<8x1xf32>
      tpu.vector_store %arg9[%c0_15, %c0_16], %12 {strides = array<i32>} : memref<8x1xf32, #tpu.memory_space<vmem>>, vector<8x1xf32>,
    } else {
    }
    %c0_i32_9 = arith.constant 0 : i32
    %16 = arith.cmpi sgt, %arg0, %c0_i32_9 : i32
    %17 = arith.extui %16 : i1 to i32
    %c0_i32_10 = arith.constant 0 : i32
    %18 = arith.cmpi ne, %17, %c0_i32_10 : i32
    scf.if %18 {
      %c1024_i32 = arith.constant 1024 : i32
      %22 = arith.muli %arg0, %c1024_i32 : i32
      %23 = arith.sitofp %22 : i32 to f32
      %cst_13 = arith.constant 1.024000e+03 : f32
      %24 = arith.addf %23, %cst_13 : f32
      %c0_14 = arith.constant 0 : index
      %c0_15 = arith.constant 0 : index
      %25 = vector.load %arg8[%c0_14, %c0_15] : memref<8x1xf32, #tpu.memory_space<vmem>>, vector<8x1xf32>
      %26 = arith.subf %7, %25 : vector<8x1xf32>
      %c0_16 = arith.constant 0 : index
      %c0_17 = arith.constant 0 : index
      %27 = vector.load %arg8[%c0_16, %c0_17] : memref<8x1xf32, #tpu.memory_space<vmem>>, vector<8x1xf32>
      %cst_18 = arith.constant 1.024000e+03 : f32
      %28 = arith.divf %cst_18, %24 : f32
      %29 = vector.broadcast %28 : f32 to vector<8x1xf32>
      %30 = arith.mulf %26, %29 : vector<8x1xf32>
      %31 = arith.addf %27, %30 : vector<8x1xf32>
      %c0_19 = arith.constant 0 : index
      %c0_20 = arith.constant 0 : index
      %32 = vector.load %arg8[%c0_19, %c0_20] : memref<8x1xf32, #tpu.memory_space<vmem>>, vector<8x1xf32>
      tpu.vector_store %arg8[%c0_19, %c0_20], %31 {strides = array<i32>} : memref<8x1xf32, #tpu.memory_space<vmem>>, vector<8x1xf32>,
      %c0_21 = arith.constant 0 : index
      %c0_22 = arith.constant 0 : index
      %33 = vector.load %arg9[%c0_21, %c0_22] : memref<8x1xf32, #tpu.memory_space<vmem>>, vector<8x1xf32>
      %34 = arith.addf %33, %12 : vector<8x1xf32>
      %35 = arith.mulf %26, %26 : vector<8x1xf32>
      %cst_23 = arith.constant 1.024000e+03 : f32
      %36 = arith.mulf %23, %cst_23 : f32
      %37 = arith.divf %36, %24 : f32
      %38 = vector.broadcast %37 : f32 to vector<8x1xf32>
      %39 = arith.mulf %35, %38 : vector<8x1xf32>
      %40 = arith.addf %34, %39 : vector<8x1xf32>
      %c0_24 = arith.constant 0 : index
      %c0_25 = arith.constant 0 : index
      %41 = vector.load %arg9[%c0_24, %c0_25] : memref<8x1xf32, #tpu.memory_space<vmem>>, vector<8x1xf32>
      tpu.vector_store %arg9[%c0_24, %c0_25], %40 {strides = array<i32>} : memref<8x1xf32, #tpu.memory_space<vmem>>, vector<8x1xf32>,
    } else {
    }
    %c0_i32_11 = arith.constant 0 : i32
    %19 = arith.cmpi eq, %arg0, %c0_i32_11 : i32
    %20 = arith.extui %19 : i1 to i32
    %c0_i32_12 = arith.constant 0 : i32
    %21 = arith.cmpi ne, %20, %c0_i32_12 : i32
    scf.if %21 {
      %c0_13 = arith.constant 0 : index
      %c0_14 = arith.constant 0 : index
      %22 = vector.load %arg8[%c0_13, %c0_14] : memref<8x1xf32, #tpu.memory_space<vmem>>, vector<8x1xf32>
      %c0_15 = arith.constant 0 : index
      %c0_16 = arith.constant 0 : index
      %23 = vector.load %arg9[%c0_15, %c0_16] : memref<8x1xf32, #tpu.memory_space<vmem>>, vector<8x1xf32>
      %cst_17 = arith.constant 9.765625E-4 : f32
      %24 = vector.broadcast %cst_17 : f32 to vector<8x1xf32>
      %25 = arith.mulf %23, %24 : vector<8x1xf32>
      %cst_18 = arith.constant 9.99999974E-6 : f32
      %26 = vector.broadcast %cst_18 : f32 to vector<8x1xf32>
      %27 = arith.addf %25, %26 : vector<8x1xf32>
      %28 = math.rsqrt %27 : vector<8x1xf32>
      %c0_19 = arith.constant 0 : index
      %c0_20 = arith.constant 0 : index
      %29 = vector.load %arg3[%c0_19, %c0_20] : memref<8x1xf32, #tpu.memory_space<vmem>>, vector<8x1xf32>
      %30 = arith.mulf %28, %29 : vector<8x1xf32>
      %c0_21 = arith.constant 0 : index
      %c0_22 = arith.constant 0 : index
      %31 = vector.load %arg4[%c0_21, %c0_22] : memref<8x1xf32, #tpu.memory_space<vmem>>, vector<8x1xf32>
      %32 = arith.mulf %22, %30 : vector<8x1xf32>
      %33 = arith.subf %31, %32 : vector<8x1xf32>
      %c0_23 = arith.constant 0 : index
      %34 = memref.load %arg5[%c0_23] : memref<1xf32, #tpu.memory_space<smem>>
      %c0_24 = arith.constant 0 : index
      %c0_25 = arith.constant 0 : index
      %35 = vector.load %arg7[%c0_24, %c0_25] : memref<8x1024xf32, #tpu.memory_space<vmem>>, vector<8x1024xf32>
      %36 = vector.broadcast %30 : vector<8x1xf32> to vector<8x1024xf32>
      %37 = arith.mulf %35, %36 : vector<8x1024xf32>
      %38 = vector.broadcast %33 : vector<8x1xf32> to vector<8x1024xf32>
      %39 = arith.addf %37, %38 : vector<8x1024xf32>
      %cst_26 = arith.constant 0.000000e+00 : f32
      %40 = vector.broadcast %cst_26 : f32 to vector<8x1024xf32>
      %41 = arith.cmpf oge, %39, %40 : vector<8x1024xf32>
      %42 = vector.broadcast %34 : f32 to vector<8x1024xf32>
      %43 = arith.mulf %42, %39 : vector<8x1024xf32>
      %44 = arith.select %41, %39, %43 : vector<8x1024xi1>, vector<8x1024xf32>
      %45 = arith.truncf %44 : vector<8x1024xf32> to vector<8x1024xbf16>
      %c0_27 = arith.constant 0 : index
      %c0_28 = arith.constant 0 : index
      %46 = vector.load %arg6[%c0_27, %c0_28] : memref<8x1024xbf16, #tpu.memory_space<vmem>>, vector<8x1024xbf16>
      tpu.vector_store %arg6[%c0_27, %c0_28], %45 {strides = array<i32>} : memref<8x1024xbf16, #tpu.memory_space<vmem>>, vector<8x1024xbf16>,
    } else {
    }
    return
  }
  func.func @transform_0(%arg0: i32) -> (i32, i32) {
    %c0_i32 = arith.constant 0 : i32
    %c0_i32_0 = arith.constant 0 : i32
    %c0_i32_1 = arith.constant 0 : i32
    return %c0_i32, %c0_i32_0 : i32, i32
  }
  func.func @transform_1(%arg0: i32) -> (i32, i32) {
    %c0_i32 = arith.constant 0 : i32
    %c0_i32_0 = arith.constant 0 : i32
    return %c0_i32, %arg0 : i32, i32
  }
  func.func @transform_2(%arg0: i32) -> (i32, i32) {
    %c0_i32 = arith.constant 0 : i32
    %c0_i32_0 = arith.constant 0 : i32
    %c0_i32_1 = arith.constant 0 : i32
    return %c0_i32, %c0_i32_0 : i32, i32
  }
  func.func @transform_3(%arg0: i32) -> (i32, i32) {
    %c0_i32 = arith.constant 0 : i32
    %c0_i32_0 = arith.constant 0 : i32
    %c0_i32_1 = arith.constant 0 : i32
    return %c0_i32, %c0_i32_0 : i32, i32
  }
  func.func @transform_4(%arg0: i32) -> i32 {
    %c0_i32 = arith.constant 0 : i32
    %c0_i32_0 = arith.constant 0 : i32
    return %c0_i32 : i32
  }
  func.func @transform_5(%arg0: i32) -> (i32, i32) {
    %c0_i32 = arith.constant 0 : i32
    %c0_i32_0 = arith.constant 0 : i32
    %c0_i32_1 = arith.constant 0 : i32
    return %c0_i32, %c0_i32_0 : i32, i32
  }
}

module attributes {stable_mosaic.version = 11 : i64} {
  func.func @_conv_bn_prelu_fused_kernel(%arg0: i32, %arg1: memref<8x216xbf16, #tpu.memory_space<vmem>>, %arg2: memref<216x1024xbf16, #tpu.memory_space<vmem>>, %arg3: memref<8x1xf32, #tpu.memory_space<vmem>>, %arg4: memref<8x1xf32, #tpu.memory_space<vmem>>, %arg5: memref<1xf32, #tpu.memory_space<smem>>, %arg6: memref<8x1024xbf16, #tpu.memory_space<vmem>>, %arg7: memref<8x1024xf32, #tpu.memory_space<vmem>>, %arg8: memref<8x1xf32, #tpu.memory_space<vmem>>, %arg9: memref<8x1xf32, #tpu.memory_space<vmem>>) attributes {dimension_semantics = [#tpu.dimension_semantics<arbitrary>], iteration_bounds = array<i64: 1>, scalar_prefetch = 0 : i64, scratch_operands = 3 : i64, tpu.core_type = #tpu.core_type<tc>, window_params = [{pipeline_mode = #tpu.pipeline_mode<synchronous>, transform_indices = @transform_0, window_bounds = array<i64: 8, 216>}, {transform_indices = @transform_1, window_bounds = array<i64: 216, 1024>}, {pipeline_mode = #tpu.pipeline_mode<synchronous>, transform_indices = @transform_2, window_bounds = array<i64: 8, 1>}, {pipeline_mode = #tpu.pipeline_mode<synchronous>, transform_indices = @transform_3, window_bounds = array<i64: 8, 1>}, {transform_indices = @transform_4, window_bounds = array<i64: 1>}, {pipeline_mode = #tpu.pipeline_mode<synchronous>, transform_indices = @transform_5, window_bounds = array<i64: 8, 1024>}]} {
    %c0 = arith.constant 0 : index
    %c0_0 = arith.constant 0 : index
    %0 = vector.load %arg1[%c0, %c0_0] : memref<8x216xbf16, #tpu.memory_space<vmem>>, vector<8x216xbf16>
    %c0_1 = arith.constant 0 : index
    %c0_2 = arith.constant 0 : index
    %1 = vector.load %arg2[%c0_1, %c0_2] : memref<216x1024xbf16, #tpu.memory_space<vmem>>, vector<216x1024xbf16>
    %cst = arith.constant dense<0.000000e+00> : vector<8x1024xf32>
    %2 = tpu.matmul %0, %1, %cst {dimension_numbers = #tpu.dot_dimension_numbers<[1], [0], [0], [1], [0, 0, 1, 1], [], []>} : vector<8x216xbf16>, vector<216x1024xbf16>, vector<8x1024xf32> -> vector<8x1024xf32>
    %c0_3 = arith.constant 0 : index
    %c0_4 = arith.constant 0 : index
    %3 = vector.load %arg7[%c0_3, %c0_4] : memref<8x1024xf32, #tpu.memory_space<vmem>>, vector<8x1024xf32>
    tpu.vector_store %arg7[%c0_3, %c0_4], %2 {strides = array<i32>} : memref<8x1024xf32, #tpu.memory_space<vmem>>, vector<8x1024xf32>,
    %cst_5 = arith.constant dense<0.000000e+00> : vector<8xf32>
    %4 = vector.multi_reduction <add>, %2, %cst_5 [1] : vector<8x1024xf32> to vector<8xf32>
    %5 = vector.shape_cast %4 : vector<8xf32> to vector<8x1xf32>
    %cst_6 = arith.constant 1.024000e+03 : f32
    %6 = vector.broadcast %cst_6 : f32 to vector<8x1xf32>
    %7 = arith.divf %5, %6 : vector<8x1xf32>
    %8 = vector.broadcast %7 : vector<8x1xf32> to vector<8x1024xf32>
    %9 = arith.subf %2, %8 : vector<8x1024xf32>
    %10 = arith.mulf %9, %9 : vector<8x1024xf32>
    %cst_7 = arith.constant dense<0.000000e+00> : vector<8xf32>
    %11 = vector.multi_reduction <add>, %10, %cst_7 [1] : vector<8x1024xf32> to vector<8xf32>
    %12 = vector.shape_cast %11 : vector<8xf32> to vector<8x1xf32>
    %c0_i32 = arith.constant 0 : i32
    %13 = arith.cmpi eq, %arg0, %c0_i32 : i32
    %14 = arith.extui %13 : i1 to i32
    %c0_i32_8 = arith.constant 0 : i32
    %15 = arith.cmpi ne, %14, %c0_i32_8 : i32
    scf.if %15 {
      %c0_13 = arith.constant 0 : index
      %c0_14 = arith.constant 0 : index
      %22 = vector.load %arg8[%c0_13, %c0_14] : memref<8x1xf32, #tpu.memory_space<vmem>>, vector<8x1xf32>
      tpu.vector_store %arg8[%c0_13, %c0_14], %7 {strides = array<i32>} : memref<8x1xf32, #tpu.memory_space<vmem>>, vector<8x1xf32>,
      %c0_15 = arith.constant 0 : index
      %c0_16 = arith.constant 0 : index
      %23 = vector.load %arg9[%c0_15, %c0_16] : memref<8x1xf32, #tpu.memory_space<vmem>>, vector<8x1xf32>
      tpu.vector_store %arg9[%c0_15, %c0_16], %12 {strides = array<i32>} : memref<8x1xf32, #tpu.memory_space<vmem>>, vector<8x1xf32>,
    } else {
    }
    %c0_i32_9 = arith.constant 0 : i32
    %16 = arith.cmpi sgt, %arg0, %c0_i32_9 : i32
    %17 = arith.extui %16 : i1 to i32
    %c0_i32_10 = arith.constant 0 : i32
    %18 = arith.cmpi ne, %17, %c0_i32_10 : i32
    scf.if %18 {
      %c1024_i32 = arith.constant 1024 : i32
      %22 = arith.muli %arg0, %c1024_i32 : i32
      %23 = arith.sitofp %22 : i32 to f32
      %cst_13 = arith.constant 1.024000e+03 : f32
      %24 = arith.addf %23, %cst_13 : f32
      %c0_14 = arith.constant 0 : index
      %c0_15 = arith.constant 0 : index
      %25 = vector.load %arg8[%c0_14, %c0_15] : memref<8x1xf32, #tpu.memory_space<vmem>>, vector<8x1xf32>
      %26 = arith.subf %7, %25 : vector<8x1xf32>
      %c0_16 = arith.constant 0 : index
      %c0_17 = arith.constant 0 : index
      %27 = vector.load %arg8[%c0_16, %c0_17] : memref<8x1xf32, #tpu.memory_space<vmem>>, vector<8x1xf32>
      %cst_18 = arith.constant 1.024000e+03 : f32
      %28 = arith.divf %cst_18, %24 : f32
      %29 = vector.broadcast %28 : f32 to vector<8x1xf32>
      %30 = arith.mulf %26, %29 : vector<8x1xf32>
      %31 = arith.addf %27, %30 : vector<8x1xf32>
      %c0_19 = arith.constant 0 : index
      %c0_20 = arith.constant 0 : index
      %32 = vector.load %arg8[%c0_19, %c0_20] : memref<8x1xf32, #tpu.memory_space<vmem>>, vector<8x1xf32>
      tpu.vector_store %arg8[%c0_19, %c0_20], %31 {strides = array<i32>} : memref<8x1xf32, #tpu.memory_space<vmem>>, vector<8x1xf32>,
      %c0_21 = arith.constant 0 : index
      %c0_22 = arith.constant 0 : index
      %33 = vector.load %arg9[%c0_21, %c0_22] : memref<8x1xf32, #tpu.memory_space<vmem>>, vector<8x1xf32>
      %34 = arith.addf %33, %12 : vector<8x1xf32>
      %35 = arith.mulf %26, %26 : vector<8x1xf32>
      %cst_23 = arith.constant 1.024000e+03 : f32
      %36 = arith.mulf %23, %cst_23 : f32
      %37 = arith.divf %36, %24 : f32
      %38 = vector.broadcast %37 : f32 to vector<8x1xf32>
      %39 = arith.mulf %35, %38 : vector<8x1xf32>
      %40 = arith.addf %34, %39 : vector<8x1xf32>
      %c0_24 = arith.constant 0 : index
      %c0_25 = arith.constant 0 : index
      %41 = vector.load %arg9[%c0_24, %c0_25] : memref<8x1xf32, #tpu.memory_space<vmem>>, vector<8x1xf32>
      tpu.vector_store %arg9[%c0_24, %c0_25], %40 {strides = array<i32>} : memref<8x1xf32, #tpu.memory_space<vmem>>, vector<8x1xf32>,
    } else {
    }
    %c0_i32_11 = arith.constant 0 : i32
    %19 = arith.cmpi eq, %arg0, %c0_i32_11 : i32
    %20 = arith.extui %19 : i1 to i32
    %c0_i32_12 = arith.constant 0 : i32
    %21 = arith.cmpi ne, %20, %c0_i32_12 : i32
    scf.if %21 {
      %c0_13 = arith.constant 0 : index
      %c0_14 = arith.constant 0 : index
      %22 = vector.load %arg8[%c0_13, %c0_14] : memref<8x1xf32, #tpu.memory_space<vmem>>, vector<8x1xf32>
      %c0_15 = arith.constant 0 : index
      %c0_16 = arith.constant 0 : index
      %23 = vector.load %arg9[%c0_15, %c0_16] : memref<8x1xf32, #tpu.memory_space<vmem>>, vector<8x1xf32>
      %cst_17 = arith.constant 9.765625E-4 : f32
      %24 = vector.broadcast %cst_17 : f32 to vector<8x1xf32>
      %25 = arith.mulf %23, %24 : vector<8x1xf32>
      %cst_18 = arith.constant 9.99999974E-6 : f32
      %26 = vector.broadcast %cst_18 : f32 to vector<8x1xf32>
      %27 = arith.addf %25, %26 : vector<8x1xf32>
      %28 = math.rsqrt %27 : vector<8x1xf32>
      %c0_19 = arith.constant 0 : index
      %c0_20 = arith.constant 0 : index
      %29 = vector.load %arg3[%c0_19, %c0_20] : memref<8x1xf32, #tpu.memory_space<vmem>>, vector<8x1xf32>
      %30 = arith.mulf %28, %29 : vector<8x1xf32>
      %c0_21 = arith.constant 0 : index
      %c0_22 = arith.constant 0 : index
      %31 = vector.load %arg4[%c0_21, %c0_22] : memref<8x1xf32, #tpu.memory_space<vmem>>, vector<8x1xf32>
      %32 = arith.mulf %22, %30 : vector<8x1xf32>
      %33 = arith.subf %31, %32 : vector<8x1xf32>
      %c0_23 = arith.constant 0 : index
      %34 = memref.load %arg5[%c0_23] : memref<1xf32, #tpu.memory_space<smem>>
      %c0_24 = arith.constant 0 : index
      %c0_25 = arith.constant 0 : index
      %35 = vector.load %arg7[%c0_24, %c0_25] : memref<8x1024xf32, #tpu.memory_space<vmem>>, vector<8x1024xf32>
      %36 = vector.broadcast %30 : vector<8x1xf32> to vector<8x1024xf32>
      %37 = arith.mulf %35, %36 : vector<8x1024xf32>
      %38 = vector.broadcast %33 : vector<8x1xf32> to vector<8x1024xf32>
      %39 = arith.addf %37, %38 : vector<8x1024xf32>
      %cst_26 = arith.constant 0.000000e+00 : f32
      %40 = vector.broadcast %cst_26 : f32 to vector<8x1024xf32>
      %41 = arith.cmpf oge, %39, %40 : vector<8x1024xf32>
      %42 = vector.broadcast %34 : f32 to vector<8x1024xf32>
      %43 = arith.mulf %42, %39 : vector<8x1024xf32>
      %44 = arith.select %41, %39, %43 : vector<8x1024xi1>, vector<8x1024xf32>
      %45 = arith.truncf %44 : vector<8x1024xf32> to vector<8x1024xbf16>
      %c0_27 = arith.constant 0 : index
      %c0_28 = arith.constant 0 : index
      %46 = vector.load %arg6[%c0_27, %c0_28] : memref<8x1024xbf16, #tpu.memory_space<vmem>>, vector<8x1024xbf16>
      tpu.vector_store %arg6[%c0_27, %c0_28], %45 {strides = array<i32>} : memref<8x1024xbf16, #tpu.memory_space<vmem>>, vector<8x1024xbf16>,
    } else {
    }
    return
  }
  func.func @transform_0(%arg0: i32) -> (i32, i32) {
    %c0_i32 = arith.constant 0 : i32
    %c0_i32_0 = arith.constant 0 : i32
    %c0_i32_1 = arith.constant 0 : i32
    return %c0_i32, %c0_i32_0 : i32, i32
  }
  func.func @transform_1(%arg0: i32) -> (i32, i32) {
    %c0_i32 = arith.constant 0 : i32
    %c0_i32_0 = arith.constant 0 : i32
    return %c0_i32, %arg0 : i32, i32
  }
  func.func @transform_2(%arg0: i32) -> (i32, i32) {
    %c0_i32 = arith.constant 0 : i32
    %c0_i32_0 = arith.constant 0 : i32
    %c0_i32_1 = arith.constant 0 : i32
    return %c0_i32, %c0_i32_0 : i32, i32
  }
  func.func @transform_3(%arg0: i32) -> (i32, i32) {
    %c0_i32 = arith.constant 0 : i32
    %c0_i32_0 = arith.constant 0 : i32
    %c0_i32_1 = arith.constant 0 : i32
    return %c0_i32, %c0_i32_0 : i32, i32
  }
  func.func @transform_4(%arg0: i32) -> i32 {
    %c0_i32 = arith.constant 0 : i32
    %c0_i32_0 = arith.constant 0 : i32
    return %c0_i32 : i32
  }
  func.func @transform_5(%arg0: i32) -> (i32, i32) {
    %c0_i32 = arith.constant 0 : i32
    %c0_i32_0 = arith.constant 0 : i32
    %c0_i32_1 = arith.constant 0 : i32
    return %c0_i32, %c0_i32_0 : i32, i32
  }
}

module attributes {stable_mosaic.version = 11 : i64} {
  func.func @_maxpool_kernel(%arg0: i32, %arg1: memref<27x8x128xbf16, #tpu.memory_space<vmem>>, %arg2: memref<8x128xf32, #tpu.memory_space<vmem>>) attributes {dimension_semantics = [#tpu.dimension_semantics<parallel>], iteration_bounds = array<i64: 1>, scalar_prefetch = 0 : i64, scratch_operands = 0 : i64, tpu.core_type = #tpu.core_type<tc>, window_params = [{transform_indices = @transform_0, window_bounds = array<i64: 27, 8, 128>}, {transform_indices = @transform_1, window_bounds = array<i64: 8, 128>}]} {
    %c0 = arith.constant 0 : index
    %c0_0 = arith.constant 0 : index
    %c0_1 = arith.constant 0 : index
    %0 = vector.load %arg1[%c0, %c0_0, %c0_1] : memref<27x8x128xbf16, #tpu.memory_space<vmem>>, vector<27x8x128xbf16>
    %1 = arith.extf %0 : vector<27x8x128xbf16> to vector<27x8x128xf32>
    %cst = arith.constant dense<0xFF800000> : vector<8x128xf32>
    %2 = vector.multi_reduction <maximumf>, %1, %cst [0] : vector<27x8x128xf32> to vector<8x128xf32>
    %c0_2 = arith.constant 0 : index
    %c0_3 = arith.constant 0 : index
    %3 = vector.load %arg2[%c0_2, %c0_3] : memref<8x128xf32, #tpu.memory_space<vmem>>, vector<8x128xf32>
    tpu.vector_store %arg2[%c0_2, %c0_3], %2 {strides = array<i32>} : memref<8x128xf32, #tpu.memory_space<vmem>>, vector<8x128xf32>,
    return
  }
  func.func @transform_0(%arg0: i32) -> (i32, i32, i32) {
    %c0_i32 = arith.constant 0 : i32
    %c0_i32_0 = arith.constant 0 : i32
    %c0_i32_1 = arith.constant 0 : i32
    return %c0_i32, %c0_i32_0, %arg0 : i32, i32, i32
  }
  func.func @transform_1(%arg0: i32) -> (i32, i32) {
    %c0_i32 = arith.constant 0 : i32
    %c0_i32_0 = arith.constant 0 : i32
    return %c0_i32, %arg0 : i32, i32
  }
}

</mosaic_0001>

<bundles_post_ra>
// kernel: extract_feature_forward.3
= control target key start
LH: loop header
LB: loop body
LE: loop exit
PB: predicated region body
PF: predicated region fallthrough
CT: control target
= control target key end

     0   :  { %vm1070_vm0 = vcmask 1042432   ;;  %vm1071_vm1 = vcmask 1043456   ;;  %v1828_v3 = vmov 65535   ;;  %v1829_v5 = vmov 0   ;;  %s2504_s1 = inlined_call_operand.vmem [shape: bf16[343,1024], index: 1, kind: input, shape index: {}]   ;;  %s2505_s0 = inlined_call_operand.vmem [shape: bf16[8,343], index: 0, kind: input, shape index: {}]   ;;  %s2506_s2 = inlined_call_operand.vmem [shape: f32[8,1], index: 2, kind: input, shape index: {}]   ;;  %s2507_s3 = inlined_call_operand.vmem [shape: f32[8,1], index: 3, kind: input, shape index: {}]   ;;  %s2508_s4 = inlined_call_operand.<no memory space> [shape: f32[1], index: 4, kind: input, shape index: {}]   ;;  %s2509_s5 = inlined_call_operand.vmem [shape: bf16[8,1024], index: 5, kind: output, shape index: {}]  }
   0x1   :  { %v80_v0 = vld [vmem:[%s2504_s1 + $0x1c0] sm:$0xff]  ;;  %v1072_v4 = vsel %vm1070_vm0, 4294967295, %v1828_v3  ;;  %1171 = vmatprep.mubr.bf16.mxu1 %v1829_v5  ;;  %1813 = vset.pattern.permute.xlu1 %v1829_v5  ;;  %v81_v54 = vld [vmem:[%s2504_s1 + $0x1c8] sm:$0xff]  ;;  %vm1066_vm2 = vcmask 711680   ;;  %vm1474_vm3 = vcmask 7168  }
   0x2   :  { %v84_v1 = vld [vmem:[%s2504_s1 + $0x1e0] sm:$0xff]  ;;  %v1871_v9 = vsel %vm1071_vm1, %v1072_v4, 0  ;;  %1814 = vset.pattern.permute.xlu0 %v1829_v5  ;;  %v85_v55 = vld [vmem:[%s2504_s1 + $0x1e8] sm:$0xff] }
   0x3   :  { %v192_v2 = vld [vmem:[%s2504_s1 + $0x540] sm:$0xff]  ;;  %v1680_v6 = vcombine.high %v80_v0, %v84_v1  ;;  %v1679_v7 = vcombine.low %v80_v0, %v84_v1  ;;  %v1682_v62 = vcombine.high %v81_v54, %v85_v55  ;;  %v73_v0 = vld [vmem:[%s2504_s1 + $0x188] sm:$0xff]  ;;  %v1681_v4 = vcombine.low %v81_v54, %v85_v55 }
   0x4   :  { %v1792_v8 = vcombine.high %v192_v2, %v192_v2  ;;  %v72_v10 = vld [vmem:[%s2504_s1 + $0x180] sm:$0xff]  ;;  %v1791_v13 = vcombine.low %v192_v2, %v192_v2  ;;  %v77_v1 = vld [vmem:[%s2504_s1 + $0x1a8] sm:$0xff] }
   0x5   :  { %v76_v11 = vld [vmem:[%s2504_s1 + $0x1a0] sm:$0xff]  ;;  %1098 = vmatprep.subr.bf16.mxu0 %v1680_v6  ;;  %v1973_v2 = vld [vmem:[%s2505_s0 + $0x8] ss:$0 sps:$4 sm:$0xff]  }
   0x6   :  { %v184_v12 = vld [vmem:[%s2504_s1 + $0x500] sm:$0xff]  ;;  %v1672_v14 = vcombine.high %v72_v10, %v76_v11  ;;  %v1078_v18 = vand.u32 %v1792_v8, %v1871_v9  ;;  %1099 = vmatpush1.bf16.msra.mxu0 %v1679_v7  ;;  %v1075_v20 = vand.u32 %v1791_v13, %v1871_v9  ;;  %v1671_v21 = vcombine.low %v72_v10, %v76_v11  ;;  %v65_v11 = vld [vmem:[%s2504_s1 + $0x148] sm:$0xff] }
   0x7   :  { %v188_v15 = vld [vmem:[%s2504_s1 + $0x520] sm:$0xff]  ;;  %v1674_v8 = vcombine.high %v73_v0, %v77_v1 }
   0x8   :  { %v64_v16 = vld [vmem:[%s2504_s1 + $0x140] sm:$0xff]  ;;  %v1784_v19 = vcombine.high %v184_v12, %v188_v15  ;;  %1143 = vmatprep.subr.bf16.mxu1 %v1078_v18  ;;  %1100 = vmatprep.subr.bf16.mxu0 %v1672_v14  ;;  %v1783_v25 = vcombine.low %v184_v12, %v188_v15  ;;  %v69_v12 = vld [vmem:[%s2504_s1 + $0x168] sm:$0xff]  ;;  %v1673_v14 = vcombine.low %v73_v0, %v77_v1  ;;  %v195_v0 = vld [vmem:[%s2504_s1 + $0x558] sm:$0xff] }
   0x9   :  { %v68_v17 = vld [vmem:[%s2504_s1 + $0x160] sm:$0xff]  ;;  %1144 = vmatpush1.bf16.msra.mxu1 %v1075_v20  ;;  %v1666_v18 = vcombine.high %v65_v11, %v69_v12 }
   0xa   :  { %v176_v22 = vld [vmem:[%s2504_s1 + $0x4c0] sm:$0xff]  ;;  %v1664_v24 = vcombine.high %v64_v16, %v68_v17  ;;  %1145 = vmatprep.subr.bf16.mxu1 %v1784_v19  ;;  %1101 = vmatpush1.bf16.msra.mxu0 %v1671_v21  ;;  %v1663_v29 = vcombine.low %v64_v16, %v68_v17  ;;  %v194_v17 = vld [vmem:[%s2504_s1 + $0x550] sm:$0xff] }
   0xb   :  { %v180_v23 = vld [vmem:[%s2504_s1 + $0x4e0] sm:$0xff]  ;;  %v1795_v19 = vcombine.low %v194_v17, %v194_v17  ;;  %v1796_v20 = vcombine.high %v194_v17, %v194_v17 }
   0xc   :  { %v56_v26 = vld [vmem:[%s2504_s1 + $0x100] sm:$0xff]  ;;  %v1776_v28 = vcombine.high %v176_v22, %v180_v23  ;;  %1102 = vmatprep.subr.bf16.mxu0 %v1664_v24  ;;  %v1775_v33 = vcombine.low %v176_v22, %v180_v23  ;;  %v57_v22 = vld [vmem:[%s2504_s1 + $0x108] sm:$0xff] }
   0xd   :  { %v60_v27 = vld [vmem:[%s2504_s1 + $0x120] sm:$0xff]  ;;  %1146 = vmatpush1.bf16.msra.mxu1 %v1783_v25  ;;  %v61_v23 = vld [vmem:[%s2504_s1 + $0x128] sm:$0xff]  ;;  %v2006_v25 = vand.u32 %v1796_v20, %v1871_v9 }
   0xe   :  { %v168_v30 = vld [vmem:[%s2504_s1 + $0x480] sm:$0xff]  ;;  %v1656_v32 = vcombine.high %v56_v26, %v60_v27  ;;  %1147 = vmatprep.subr.bf16.mxu1 %v1776_v28  ;;  %1103 = vmatpush1.bf16.msra.mxu0 %v1663_v29  ;;  %v1655_v37 = vcombine.low %v56_v26, %v60_v27  ;;  %v2009_v26 = vand.u32 %v1795_v19, %v1871_v9  ;;  %v137_v19 = vld [vmem:[%s2504_s1 + $0x388] sm:$0xff] }
   0xf   :  { %v172_v31 = vld [vmem:[%s2504_s1 + $0x4a0] sm:$0xff]  ;;  %v1665_v27 = vcombine.low %v65_v11, %v69_v12  ;;  %v141_v20 = vld [vmem:[%s2504_s1 + $0x3a8] sm:$0xff] }
  0x10   :  { %v48_v34 = vld [vmem:[%s2504_s1 + $0xc0] sm:$0xff]  ;;  %v1768_v36 = vcombine.high %v168_v30, %v172_v31  ;;  %1104 = vmatprep.subr.bf16.mxu0 %v1656_v32  ;;  %v1767_v41 = vcombine.low %v168_v30, %v172_v31  ;;  %v1658_v30 = vcombine.high %v57_v22, %v61_v23  ;;  %v49_v32 = vld [vmem:[%s2504_s1 + $0xc8] sm:$0xff] }
  0x11   :  { %v52_v35 = vld [vmem:[%s2504_s1 + $0xe0] sm:$0xff]  ;;  %1148 = vmatpush1.bf16.msra.mxu1 %v1775_v33  ;;  %v53_v33 = vld [vmem:[%s2504_s1 + $0xe8] sm:$0xff] }
  0x12   :  { %v160_v38 = vld [vmem:[%s2504_s1 + $0x440] sm:$0xff]  ;;  %v1648_v40 = vcombine.high %v48_v34, %v52_v35  ;;  %1149 = vmatprep.subr.bf16.mxu1 %v1768_v36  ;;  %1105 = vmatpush1.bf16.msra.mxu0 %v1655_v37  ;;  %v1647_v45 = vcombine.low %v48_v34, %v52_v35  ;;  %v1657_v35 = vcombine.low %v57_v22, %v61_v23 }
  0x13   :  { %v164_v39 = vld [vmem:[%s2504_s1 + $0x460] sm:$0xff] }
  0x14   :  { %v40_v42 = vld [vmem:[%s2504_s1 + $0x80] sm:$0xff]  ;;  %v1760_v44 = vcombine.high %v160_v38, %v164_v39  ;;  %1106 = vmatprep.subr.bf16.mxu0 %v1648_v40  ;;  %v1759_v49 = vcombine.low %v160_v38, %v164_v39  ;;  %v1650_v38 = vcombine.high %v49_v32, %v53_v33  ;;  %v41_v40 = vld [vmem:[%s2504_s1 + $0x88] sm:$0xff] }
  0x15   :  { %v44_v43 = vld [vmem:[%s2504_s1 + $0xa0] sm:$0xff]  ;;  %1150 = vmatpush1.bf16.msra.mxu1 %v1767_v41  ;;  %v45_v41 = vld [vmem:[%s2504_s1 + $0xa8] sm:$0xff] }
  0x16   :  { %v152_v46 = vld [vmem:[%s2504_s1 + $0x400] sm:$0xff]  ;;  %v1640_v48 = vcombine.high %v40_v42, %v44_v43  ;;  %1151 = vmatprep.subr.bf16.mxu1 %v1760_v44  ;;  %1107 = vmatpush1.bf16.msra.mxu0 %v1647_v45  ;;  %v1639_v53 = vcombine.low %v40_v42, %v44_v43  ;;  %v1649_v43 = vcombine.low %v49_v32, %v53_v33  ;;  %v185_v33 = vld [vmem:[%s2504_s1 + $0x508] sm:$0xff] }
  0x17   :  { %v156_v47 = vld [vmem:[%s2504_s1 + $0x420] sm:$0xff]  ;;  %v1737_v32 = vcombine.low %v137_v19, %v141_v20 }
  0x18   :  { %v32_v50 = vld [vmem:[%s2504_s1 + $0x40] sm:$0xff]  ;;  %v1752_v52 = vcombine.high %v152_v46, %v156_v47  ;;  %1108 = vmatprep.subr.bf16.mxu0 %v1640_v48  ;;  %v1751_v58 = vcombine.low %v152_v46, %v156_v47  ;;  %v1642_v46 = vcombine.high %v41_v40, %v45_v41  ;;  %v33_v48 = vld [vmem:[%s2504_s1 + $0x48] sm:$0xff] }
  0x19   :  { %v36_v51 = vld [vmem:[%s2504_s1 + $0x60] sm:$0xff]  ;;  %1152 = vmatpush1.bf16.msra.mxu1 %v1759_v49  ;;  %v37_v49 = vld [vmem:[%s2504_s1 + $0x68] sm:$0xff] }
  0x1a   :  { %v1632_v56 = vcombine.high %v32_v50, %v36_v51  ;;  %v1951_v57 = vld [vmem:[%s2505_s0] sm:$0xff]  ;;  %1153 = vmatprep.subr.bf16.mxu1 %v1752_v52  ;;  %1109 = vmatpush1.bf16.msra.mxu0 %v1639_v53  ;;  %v1631_v63 = vcombine.low %v32_v50, %v36_v51  ;;  %v1641_v51 = vcombine.low %v41_v40, %v45_v41 }
  0x1b   :  { %v24_v59 = vld [vmem:[%s2504_s1] sm:$0xff]  ;;  %v1961_v61 = vcombine.high %v1951_v57, %v1951_v57  ;;  %v1634_v54 = vcombine.high %v33_v48, %v37_v49 }
  0x1c   :  { %v28_v60 = vld [vmem:[%s2504_s1 + $0x20] sm:$0xff]  ;;  %1110 = vmatprep.subr.bf16.mxu0 %v1632_v56  ;;  %v25_v56 = vld [vmem:[%s2504_s1 + $0x8] sm:$0xff] }
  0x1d   :  { %1130 = vmatprep.mubr.bf16.mxu0 %v1961_v61  ;;  %v1624_v3 = vcombine.high %v24_v59, %v28_v60  ;;  %1154 = vmatpush1.bf16.msra.mxu1 %v1751_v58  ;;  %v144_v6 = vld [vmem:[%s2504_s1 + $0x3c0] sm:$0xff]  ;;  %v1623_v10 = vcombine.low %v24_v59, %v28_v60  ;;  %v29_v58 = vld [vmem:[%s2504_s1 + $0x28] sm:$0xff]  ;;  %v1633_v60 = vcombine.low %v33_v48, %v37_v49 }
  0x1e   :  { %v148_v7 = vld [vmem:[%s2504_s1 + $0x3e0] sm:$0xff]  ;;  %1180 = vmatprep.subr.bf16.mxu1 %v1682_v62  ;;  %1111 = vmatpush1.bf16.msra.mxu0 %v1631_v63  ;;  %v1626_v1 = vcombine.high %v25_v56, %v29_v58  ;;  %v169_v48 = vld [vmem:[%s2504_s1 + $0x488] sm:$0xff] }
  0x1f   :  { %1112 = vmatprep.subr.bf16.mxu0 %v1624_v3  ;;  %v1744_v13 = vcombine.high %v144_v6, %v148_v7  ;;  %v136_v15 = vld [vmem:[%s2504_s1 + $0x380] sm:$0xff]  ;;  %v1743_v21 = vcombine.low %v144_v6, %v148_v7  ;;  %v1797_v3 = vcombine.low %v195_v0, %v195_v0  ;;  %v145_v7 = vld [vmem:[%s2504_s1 + $0x3c8] sm:$0xff] }
  0x20   :  { %1799 = vmatmul.mubr.msk.bf16.vlgmr.msra.gmra.mxu1 %vm1066_vm2, %v1973_v2  ;;  %v140_v16 = vld [vmem:[%s2504_s1 + $0x3a0] sm:$0xff]  ;;  %v173_v49 = vld [vmem:[%s2504_s1 + $0x4a8] sm:$0xff] }
  0x21   :  { %1181 = vmatpush1.bf16.msra.mxu1 %v1681_v4  ;;  %1212 = vmatprep.mubr.bf16.mxu1 %v1961_v61  ;;  %v1736_v24 = vcombine.high %v136_v15, %v140_v16  ;;  %v128_v28 = vld [vmem:[%s2504_s1 + $0x340] sm:$0xff]  ;;  %v1735_v31 = vcombine.low %v136_v15, %v140_v16  ;;  %v1798_v4 = vcombine.high %v195_v0, %v195_v0  ;;  %v193_v16 = vld [vmem:[%s2504_s1 + $0x548] sm:$0xff] }
  0x22   :  { %1182 = vmatprep.subr.bf16.mxu1 %v1674_v8  ;;  %1113 = vmatpush1.bf16.msra.mxu0 %v1623_v10  ;;  %v132_v29 = vld [vmem:[%s2504_s1 + $0x360] sm:$0xff]  ;;  %v149_v8 = vld [vmem:[%s2504_s1 + $0x3e8] sm:$0xff]  ;;  %v2078_v12 = vand.u32 %v1797_v3, %v1871_v9  ;;  %v1794_v22 = vcombine.high %v193_v16, %v193_v16 }
  0x23   :  { %1114 = vmatprep.subr.bf16.mxu0 %v1744_v13  ;;  %v1728_v34 = vcombine.high %v128_v28, %v132_v29  ;;  %v120_v36 = vld [vmem:[%s2504_s1 + $0x300] sm:$0xff]  ;;  %v1727_v39 = vcombine.low %v128_v28, %v132_v29  ;;  %v2075_v11 = vand.u32 %v1798_v4, %v1871_v9  ;;  %v1625_v13 = vcombine.low %v25_v56, %v29_v58  ;;  %v129_v29 = vld [vmem:[%s2504_s1 + $0x348] sm:$0xff] }
  0x24   :  { %v124_v37 = vld [vmem:[%s2504_s1 + $0x320] sm:$0xff]  ;;  %v1746_v17 = vcombine.high %v145_v7, %v149_v8  ;;  %v1745_v23 = vcombine.low %v145_v7, %v149_v8  ;;  %v1793_v28 = vcombine.low %v193_v16, %v193_v16  ;;  %v161_v56 = vld [vmem:[%s2504_s1 + $0x448] sm:$0xff]  ;;  %v86_v16 = vld [vmem:[%s2504_s1 + $0x1f0] sm:$0xff] }
  0x25   :  { %1183 = vmatpush1.bf16.msra.mxu1 %v1673_v14  ;;  %v1720_v42 = vcombine.high %v120_v36, %v124_v37  ;;  %v112_v44 = vld [vmem:[%s2504_s1 + $0x2c0] sm:$0xff]  ;;  %v1719_v47 = vcombine.low %v120_v36, %v124_v37  ;;  %v165_v58 = vld [vmem:[%s2504_s1 + $0x468] sm:$0xff] }
  0x26   :  { %1184 = vmatprep.subr.bf16.mxu1 %v1666_v18  ;;  %1115 = vmatpush2.bf16.msra.mxu0 %v1743_v21  ;;  %v116_v45 = vld [vmem:[%s2504_s1 + $0x2e0] sm:$0xff]  ;;  %v1081_v37 = vand.u32 %v1793_v28, %v1871_v9  ;;  %v1762_v0 = vcombine.high %v161_v56, %v165_v58  ;;  %v153_v3 = vld [vmem:[%s2504_s1 + $0x408] sm:$0xff]  ;;  %v1761_v7 = vcombine.low %v161_v56, %v165_v58 }
  0x27   :  { %1116 = vmatprep.subr.bf16.mxu0 %v1736_v24  ;;  %v1712_v50 = vcombine.high %v112_v44, %v116_v45  ;;  %v104_v52 = vld [vmem:[%s2504_s1 + $0x280] sm:$0xff]  ;;  %v1711_v55 = vcombine.low %v112_v44, %v116_v45  ;;  %v1738_v24 = vcombine.high %v137_v19, %v141_v20  ;;  %v113_v44 = vld [vmem:[%s2504_s1 + $0x2c8] sm:$0xff] }
  0x28   :  { %v108_v53 = vld [vmem:[%s2504_s1 + $0x2a0] sm:$0xff]  ;;  %v117_v45 = vld [vmem:[%s2504_s1 + $0x2e8] sm:$0xff] }
  0x29   :  { %1185 = vmatpush1.bf16.msra.mxu1 %v1665_v27  ;;  %v1704_v59 = vcombine.high %v104_v52, %v108_v53  ;;  %v96_v62 = vld [vmem:[%s2504_s1 + $0x240] sm:$0xff]  ;;  %v1703_v6 = vcombine.low %v104_v52, %v108_v53  ;;  %v105_v52 = vld [vmem:[%s2504_s1 + $0x288] sm:$0xff] }
  0x2a   :  { %1186 = vmatprep.subr.bf16.mxu1 %v1658_v30  ;;  %1117 = vmatpush2.bf16.msra.mxu0 %v1735_v31  ;;  %v100_v63 = vld [vmem:[%s2504_s1 + $0x260] sm:$0xff]  ;;  %v133_v30 = vld [vmem:[%s2504_s1 + $0x368] sm:$0xff]  ;;  %v1084_v31 = vand.u32 %v1794_v22, %v1871_v9  ;;  %v78_v22 = vld [vmem:[%s2504_s1 + $0x1b0] sm:$0xff] }
  0x2b   :  { %1118 = vmatprep.subr.bf16.mxu0 %v1728_v34  ;;  %v1696_v10 = vcombine.high %v96_v62, %v100_v63  ;;  %v88_v14 = vld [vmem:[%s2504_s1 + $0x200] sm:$0xff]  ;;  %v1695_v18 = vcombine.low %v96_v62, %v100_v63  ;;  %v189_v34 = vld [vmem:[%s2504_s1 + $0x528] sm:$0xff]  ;;  %v1730_v36 = vcombine.high %v129_v29, %v133_v30  ;;  %v1729_v41 = vcombine.low %v129_v29, %v133_v30  ;;  %v66_v29 = vld [vmem:[%s2504_s1 + $0x150] sm:$0xff] }
  0x2c   :  { %v92_v15 = vld [vmem:[%s2504_s1 + $0x220] sm:$0xff]  ;;  %v1786_v40 = vcombine.high %v185_v33, %v189_v34  ;;  %v181_v9 = vld [vmem:[%s2504_s1 + $0x4e8] sm:$0xff]  ;;  %v70_v30 = vld [vmem:[%s2504_s1 + $0x170] sm:$0xff] }
  0x2d   :  { %1187 = vmatpush1.bf16.msra.mxu1 %v1657_v35  ;;  %v1688_v21 = vcombine.high %v88_v14, %v92_v15  ;;  %v1687_v27 = vcombine.low %v88_v14, %v92_v15  ;;  %v2110_v35 = vcombine.low %v1951_v57, %v1951_v57  ;;  %v177_v57 = vld [vmem:[%s2504_s1 + $0x4c8] sm:$0xff]  ;;  %v82_v15 = vld [vmem:[%s2504_s1 + $0x1d0] sm:$0xff] }
  0x2e   :  { %1188 = vmatprep.subr.bf16.mxu1 %v1650_v38  ;;  %1119 = vmatpush2.bf16.msra.mxu0 %v1727_v39  ;;  %v121_v38 = vld [vmem:[%s2504_s1 + $0x308] sm:$0xff]  ;;  %v1684_v19 = vcombine.high %v82_v15, %v86_v16 }
  0x2f   :  { %1120 = vmatprep.subr.bf16.mxu0 %v1720_v42  ;;  %v125_v39 = vld [vmem:[%s2504_s1 + $0x328] sm:$0xff] }
  0x30   :  { %v1722_v42 = vcombine.high %v121_v38, %v125_v39  ;;  %v109_v53 = vld [vmem:[%s2504_s1 + $0x2a8] sm:$0xff] }
  0x31   :  { %1189 = vmatpush1.bf16.msra.mxu1 %v1649_v43  ;;  %v1785_v43 = vcombine.low %v185_v33, %v189_v34  ;;  %v97_v62 = vld [vmem:[%s2504_s1 + $0x248] sm:$0xff]  ;;  %v178_v33 = vld [vmem:[%s2504_s1 + $0x4d0] sm:$0xff] }
  0x32   :  { %1190 = vmatprep.subr.bf16.mxu1 %v1642_v46  ;;  %1121 = vmatpush2.bf16.msra.mxu0 %v1719_v47  ;;  %v1778_v46 = vcombine.high %v177_v57, %v181_v9  ;;  %v1721_v47 = vcombine.low %v121_v38, %v125_v39  ;;  %v101_v63 = vld [vmem:[%s2504_s1 + $0x268] sm:$0xff]  ;;  %v182_v34 = vld [vmem:[%s2504_s1 + $0x4f0] sm:$0xff] }
  0x33   :  { %1122 = vmatprep.subr.bf16.mxu0 %v1712_v50  ;;  %v1714_v50 = vcombine.high %v113_v44, %v117_v45  ;;  %v157_v4 = vld [vmem:[%s2504_s1 + $0x428] sm:$0xff]  ;;  %v1697_v14 = vcombine.low %v97_v62, %v101_v63  ;;  %v62_v38 = vld [vmem:[%s2504_s1 + $0x130] sm:$0xff]  ;;  %v1780_v39 = vcombine.high %v178_v33, %v182_v34 }
  0x34   :  { %v89_v8 = vld [vmem:[%s2504_s1 + $0x208] sm:$0xff] }
  0x35   :  { %1191 = vmatpush1.bf16.msra.mxu1 %v1641_v51  ;;  %v1777_v51 = vcombine.low %v177_v57, %v181_v9  ;;  %v1779_v9 = vcombine.low %v178_v33, %v182_v34 }
  0x36   :  { %1192 = vmatprep.subr.bf16.mxu1 %v1634_v54  ;;  %1123 = vmatpush2.bf16.msra.mxu0 %v1711_v55  ;;  %v1770_v54 = vcombine.high %v169_v48, %v173_v49  ;;  %v1713_v55 = vcombine.low %v113_v44, %v117_v45 }
  0x37   :  { %1124 = vmatprep.subr.bf16.mxu0 %v1704_v59  ;;  %v1706_v59 = vcombine.high %v105_v52, %v109_v53 }
  0x39   :  { %1193 = vmatpush1.bf16.msra.mxu1 %v1633_v60  ;;  %v1769_v60 = vcombine.low %v169_v48, %v173_v49 }
  0x3a   :  { %1194 = vmatprep.subr.bf16.mxu1 %v1626_v1  ;;  %1125 = vmatpush2.bf16.msra.mxu0 %v1703_v6  ;;  %v1705_v1 = vcombine.low %v105_v52, %v109_v53  ;;  %v1698_v6 = vcombine.high %v97_v62, %v101_v63 }
  0x3b   :  { %1126 = vmatprep.subr.bf16.mxu0 %v1696_v10  ;;  %v93_v10 = vld [vmem:[%s2504_s1 + $0x228] sm:$0xff] }
  0x3c   :  { %v1689_v20 = vcombine.low %v89_v8, %v93_v10 }
  0x3d   :  { %1195 = vmatpush1.bf16.msra.mxu1 %v1625_v13  ;;  %v1754_v13 = vcombine.high %v153_v3, %v157_v4 }
  0x3e   :  { %1196 = vmatprep.subr.bf16.mxu1 %v1746_v17  ;;  %1127 = vmatpush2.bf16.msra.mxu0 %v1695_v18  ;;  %v1690_v17 = vcombine.high %v89_v8, %v93_v10  ;;  %v1753_v18 = vcombine.low %v153_v3, %v157_v4 }
  0x3f   :  { %1128 = vmatprep.subr.bf16.mxu0 %v1688_v21  ;;  %v74_v21 = vld [vmem:[%s2504_s1 + $0x190] sm:$0xff] }
  0x40   :  { %v1676_v28 = vcombine.high %v74_v21, %v78_v22 }
  0x41   :  { %1197 = vmatpush2.bf16.msra.mxu1 %v1745_v23  ;;  %v1683_v23 = vcombine.low %v82_v15, %v86_v16 }
  0x42   :  { %1198 = vmatprep.subr.bf16.mxu1 %v1738_v24  ;;  %1129 = vmatpush2.bf16.msra.mxu0 %v1687_v27  ;;  %v186_v24 = vld [vmem:[%s2504_s1 + $0x510] sm:$0xff] }
  0x43   :  { %1225 = vmatprep.subr.bf16.mxu0 %v1084_v31  ;;  %v190_v27 = vld [vmem:[%s2504_s1 + $0x530] sm:$0xff] }
  0x44   :  { %v1788_v31 = vcombine.high %v186_v24, %v190_v27 }
  0x45   :  { %1199 = vmatpush2.bf16.msra.mxu1 %v1737_v32  ;;  %1131 = vmatmul.mubr.bf16.vlgmr.msra.gmra.mxu0 %v2110_v35  ;;  %v1675_v32 = vcombine.low %v74_v21, %v78_v22  ;;  %v67_v21 = vld [vmem:[%s2504_s1 + $0x158] sm:$0xff] }
  0x46   :  { %1200 = vmatprep.subr.bf16.mxu1 %v1730_v36  ;;  %1226 = vmatpush1.bf16.msra.mxu0 %v1081_v37  ;;  %v1668_v36 = vcombine.high %v66_v29, %v70_v30  ;;  %v58_v37 = vld [vmem:[%s2504_s1 + $0x110] sm:$0xff]  ;;  %v71_v22 = vld [vmem:[%s2504_s1 + $0x178] sm:$0xff] }
  0x47   :  { %1253 = vmatprep.mubr.bf16.mxu0 %v1829_v5  ;;  %1227 = vmatprep.subr.bf16.mxu0 %v1786_v40  ;;  %v1667_v40 = vcombine.low %v66_v29, %v70_v30  ;;  %v1660_v57 = vcombine.high %v58_v37, %v62_v38  ;;  %v1659_v45 = vcombine.low %v58_v37, %v62_v38  ;;  %v51_v38 = vld [vmem:[%s2504_s1 + $0xd8] sm:$0xff] }
  0x48   :  { %v1670_v29 = vcombine.high %v67_v21, %v71_v22  ;;  %v1669_v34 = vcombine.low %v67_v21, %v71_v22 }
  0x49   :  { %1201 = vmatpush2.bf16.msra.mxu1 %v1729_v41  ;;  %v170_v41 = vld [vmem:[%s2504_s1 + $0x490] sm:$0xff] }
  0x4a   :  { %1202 = vmatprep.subr.bf16.mxu1 %v1722_v42  ;;  %1228 = vmatpush1.bf16.msra.mxu0 %v1785_v43  ;;  %v50_v42 = vld [vmem:[%s2504_s1 + $0xd0] sm:$0xff] }
  0x4b   :  { %1229 = vmatprep.subr.bf16.mxu0 %v1778_v46  ;;  %v54_v43 = vld [vmem:[%s2504_s1 + $0xf0] sm:$0xff] }
  0x4c   :  { %v162_v46 = vld [vmem:[%s2504_s1 + $0x450] sm:$0xff]  ;;  %v1652_v48 = vcombine.high %v50_v42, %v54_v43  ;;  %v1651_v53 = vcombine.low %v50_v42, %v54_v43  ;;  %v43_v43 = vld [vmem:[%s2504_s1 + $0x98] sm:$0xff] }
  0x4d   :  { %1203 = vmatpush2.bf16.msra.mxu1 %v1721_v47  ;;  %v166_v47 = vld [vmem:[%s2504_s1 + $0x470] sm:$0xff] }
  0x4e   :  { %1204 = vmatprep.subr.bf16.mxu1 %v1714_v50  ;;  %1230 = vmatpush1.bf16.msra.mxu0 %v1777_v51  ;;  %v42_v50 = vld [vmem:[%s2504_s1 + $0x90] sm:$0xff]  ;;  %v1764_v52 = vcombine.high %v162_v46, %v166_v47  ;;  %v1763_v58 = vcombine.low %v162_v46, %v166_v47 }
  0x4f   :  { %1231 = vmatprep.subr.bf16.mxu0 %v1770_v54  ;;  %v46_v51 = vld [vmem:[%s2504_s1 + $0xb0] sm:$0xff] }
  0x50   :  { %v154_v54 = vld [vmem:[%s2504_s1 + $0x410] sm:$0xff]  ;;  %v1644_v56 = vcombine.high %v42_v50, %v46_v51  ;;  %v1643_v63 = vcombine.low %v42_v50, %v46_v51  ;;  %v35_v51 = vld [vmem:[%s2504_s1 + $0x58] sm:$0xff] }
  0x51   :  { %1205 = vmatpush2.bf16.msra.mxu1 %v1713_v55  ;;  %v158_v55 = vld [vmem:[%s2504_s1 + $0x430] sm:$0xff] }
  0x52   :  { %1206 = vmatprep.subr.bf16.mxu1 %v1706_v59  ;;  %1232 = vmatpush1.bf16.msra.mxu0 %v1769_v60  ;;  %v34_v59 = vld [vmem:[%s2504_s1 + $0x50] sm:$0xff]  ;;  %v1756_v62 = vcombine.high %v154_v54, %v158_v55  ;;  %v1755_v4 = vcombine.low %v154_v54, %v158_v55 }
  0x53   :  { %1233 = vmatprep.subr.bf16.mxu0 %v1762_v0  ;;  %v38_v60 = vld [vmem:[%s2504_s1 + $0x70] sm:$0xff]  ;;  %v83_v0 = vld [vmem:[%s2504_s1 + $0x1d8] sm:$0xff] }
  0x54   :  { %v1636_v3 = vcombine.high %v34_v59, %v38_v60  ;;  %v1635_v10 = vcombine.low %v34_v59, %v38_v60  ;;  %v114_v47 = vld [vmem:[%s2504_s1 + $0x2d0] sm:$0xff]  ;;  %v27_v60 = vld [vmem:[%s2504_s1 + $0x18] sm:$0xff] }
  0x55   :  { %1207 = vmatpush2.bf16.msra.mxu1 %v1705_v1  ;;  %v87_v1 = vld [vmem:[%s2504_s1 + $0x1f8] sm:$0xff]  ;;  %v106_v55 = vld [vmem:[%s2504_s1 + $0x290] sm:$0xff] }
  0x56   :  { %1208 = vmatprep.subr.bf16.mxu1 %v1698_v6  ;;  %1234 = vmatpush1.bf16.msra.mxu0 %v1761_v7  ;;  %v26_v6 = vld [vmem:[%s2504_s1 + $0x10] sm:$0xff]  ;;  %v1686_v8 = vcombine.high %v83_v0, %v87_v1  ;;  %v1685_v16 = vcombine.low %v83_v0, %v87_v1 }
  0x57   :  { %1235 = vmatprep.subr.bf16.mxu0 %v1754_v13  ;;  %v30_v7 = vld [vmem:[%s2504_s1 + $0x30] sm:$0xff]  ;;  %v75_v13 = vld [vmem:[%s2504_s1 + $0x198] sm:$0xff] }
  0x58   :  { %v1628_v15 = vcombine.high %v26_v6, %v30_v7  ;;  %v98_v1 = vld [vmem:[%s2504_s1 + $0x250] sm:$0xff] }
  0x59   :  { %1209 = vmatpush2.bf16.msra.mxu1 %v1697_v14  ;;  %v79_v14 = vld [vmem:[%s2504_s1 + $0x1b8] sm:$0xff] }
  0x5a   :  { %1210 = vmatprep.subr.bf16.mxu1 %v1690_v17  ;;  %1236 = vmatpush1.bf16.msra.mxu0 %v1753_v18  ;;  %v146_v17 = vld [vmem:[%s2504_s1 + $0x3d0] sm:$0xff] }
  0x5b   :  { %1262 = vmatprep.subr.bf16.mxu0 %v1684_v19  ;;  %v150_v18 = vld [vmem:[%s2504_s1 + $0x3f0] sm:$0xff]  ;;  %v1678_v19 = vcombine.high %v75_v13, %v79_v14 }
  0x5c   :  { %v1747_v30 = vcombine.low %v146_v17, %v150_v18 }
  0x5d   :  { %1211 = vmatpush2.bf16.msra.mxu1 %v1689_v20  ;;  %1800 = vmatmul.mubr.msk.bf16.vlgmr.msra.gmra.mxu0 %vm1066_vm2, %v1973_v2  ;;  %v1627_v20 = vcombine.low %v26_v6, %v30_v7  ;;  %v147_v7 = vld [vmem:[%s2504_s1 + $0x3d8] sm:$0xff] }
  0x5e   :  { %1307 = vmatprep.subr.bf16.mxu1 %v2006_v25  ;;  %1263 = vmatpush1.bf16.msra.mxu0 %v1683_v23  ;;  %v1787_v25 = vcombine.low %v186_v24, %v190_v27  ;;  %v1748_v23 = vcombine.high %v146_v17, %v150_v18  ;;  %v1677_v24 = vcombine.low %v75_v13, %v79_v14  ;;  %v138_v27 = vld [vmem:[%s2504_s1 + $0x390] sm:$0xff]  ;;  %v139_v18 = vld [vmem:[%s2504_s1 + $0x398] sm:$0xff] }
  0x5f   :  { %1294 = vmatprep.mubr.bf16.mxu0 %v1961_v61  ;;  %1264 = vmatprep.subr.bf16.mxu0 %v1676_v28  ;;  %v142_v28 = vld [vmem:[%s2504_s1 + $0x3b0] sm:$0xff] }
  0x60   :  { %1213 = vmatmul.mubr.bf16.vlgmr.msra.gmra.mxu1 %v2110_v35  ;;  %v1740_v33 = vcombine.high %v138_v27, %v142_v28  ;;  %v1739_v37 = vcombine.low %v138_v27, %v142_v28  ;;  %v90_v14 = vld [vmem:[%s2504_s1 + $0x210] sm:$0xff]  ;;  %v135_v27 = vld [vmem:[%s2504_s1 + $0x378] sm:$0xff] }
  0x61   :  { %1308 = vmatpush1.bf16.msra.mxu1 %v2009_v26  ;;  %1335 = vmatprep.mubr.bf16.mxu1 %v1829_v5  ;;  %v174_v26 = vld [vmem:[%s2504_s1 + $0x4b0] sm:$0xff] }
  0x62   :  { %1309 = vmatprep.subr.bf16.mxu1 %v1788_v31  ;;  %1265 = vmatpush1.bf16.msra.mxu0 %v1675_v32  ;;  %v1772_v44 = vcombine.high %v170_v41, %v174_v26  ;;  %v1771_v49 = vcombine.low %v170_v41, %v174_v26  ;;  %v59_v31 = vld [vmem:[%s2504_s1 + $0x118] sm:$0xff]  ;;  %v122_v26 = vld [vmem:[%s2504_s1 + $0x310] sm:$0xff] }
  0x63   :  { %1266 = vmatprep.subr.bf16.mxu0 %v1668_v36  ;;  %v63_v32 = vld [vmem:[%s2504_s1 + $0x138] sm:$0xff]  ;;  %v134_v36 = vld [vmem:[%s2504_s1 + $0x370] sm:$0xff] }
  0x64   :  { %v1661_v41 = vcombine.low %v59_v31, %v63_v32 }
  0x65   :  { %1310 = vmatpush1.bf16.msra.mxu1 %v1787_v25  ;;  %v1662_v25 = vcombine.high %v59_v31, %v63_v32  ;;  %v123_v32 = vld [vmem:[%s2504_s1 + $0x318] sm:$0xff] }
  0x66   :  { %1311 = vmatprep.subr.bf16.mxu1 %v1780_v39  ;;  %1267 = vmatpush1.bf16.msra.mxu0 %v1667_v40  ;;  %v55_v39 = vld [vmem:[%s2504_s1 + $0xf8] sm:$0xff] }
  0x67   :  { %1268 = vmatprep.subr.bf16.mxu0 %v1660_v57  ;;  %v126_v57 = vld [vmem:[%s2504_s1 + $0x330] sm:$0xff]  ;;  %v1653_v46 = vcombine.low %v51_v38, %v55_v39 }
  0x68   :  { %v1723_v50 = vcombine.low %v122_v26, %v126_v57 }
  0x69   :  { %1312 = vmatpush1.bf16.msra.mxu1 %v1779_v9  ;;  %v1654_v9 = vcombine.high %v51_v38, %v55_v39  ;;  %v119_v39 = vld [vmem:[%s2504_s1 + $0x2f8] sm:$0xff] }
  0x6a   :  { %1313 = vmatprep.subr.bf16.mxu1 %v1772_v44  ;;  %1269 = vmatpush1.bf16.msra.mxu0 %v1659_v45  ;;  %v47_v44 = vld [vmem:[%s2504_s1 + $0xb8] sm:$0xff]  ;;  %v1724_v45 = vcombine.high %v122_v26, %v126_v57 }
  0x6b   :  { %1270 = vmatprep.subr.bf16.mxu0 %v1652_v48  ;;  %v118_v48 = vld [vmem:[%s2504_s1 + $0x2f0] sm:$0xff]  ;;  %v1645_v54 = vcombine.low %v43_v43, %v47_v44  ;;  %v171_v26 = vld [vmem:[%s2504_s1 + $0x498] sm:$0xff] }
  0x6c   :  { %v1715_v59 = vcombine.low %v114_v47, %v118_v48 }
  0x6d   :  { %1314 = vmatpush1.bf16.msra.mxu1 %v1771_v49  ;;  %v1646_v49 = vcombine.high %v43_v43, %v47_v44 }
  0x6e   :  { %1315 = vmatprep.subr.bf16.mxu1 %v1764_v52  ;;  %1271 = vmatpush1.bf16.msra.mxu0 %v1651_v53  ;;  %v39_v52 = vld [vmem:[%s2504_s1 + $0x78] sm:$0xff]  ;;  %v1716_v53 = vcombine.high %v114_v47, %v118_v48 }
  0x6f   :  { %1272 = vmatprep.subr.bf16.mxu0 %v1644_v56  ;;  %v110_v56 = vld [vmem:[%s2504_s1 + $0x2b0] sm:$0xff]  ;;  %v1637_v0 = vcombine.low %v35_v51, %v39_v52 }
  0x70   :  { %v1707_v6 = vcombine.low %v106_v55, %v110_v56 }
  0x71   :  { %1316 = vmatpush1.bf16.msra.mxu1 %v1763_v58  ;;  %v1638_v58 = vcombine.high %v35_v51, %v39_v52 }
  0x72   :  { %1317 = vmatprep.subr.bf16.mxu1 %v1756_v62  ;;  %1273 = vmatpush1.bf16.msra.mxu0 %v1643_v63  ;;  %v31_v62 = vld [vmem:[%s2504_s1 + $0x38] sm:$0xff]  ;;  %v1708_v63 = vcombine.high %v106_v55, %v110_v56 }
  0x73   :  { %1274 = vmatprep.subr.bf16.mxu0 %v1636_v3  ;;  %v102_v3 = vld [vmem:[%s2504_s1 + $0x270] sm:$0xff]  ;;  %v1629_v13 = vcombine.low %v27_v60, %v31_v62 }
  0x74   :  { %v1699_v17 = vcombine.low %v98_v1, %v102_v3 }
  0x75   :  { %1318 = vmatpush1.bf16.msra.mxu1 %v1755_v4  ;;  %v1630_v4 = vcombine.high %v27_v60, %v31_v62 }
  0x76   :  { %1344 = vmatprep.subr.bf16.mxu1 %v1686_v8  ;;  %1275 = vmatpush1.bf16.msra.mxu0 %v1635_v10  ;;  %v151_v8 = vld [vmem:[%s2504_s1 + $0x3f8] sm:$0xff]  ;;  %v1700_v10 = vcombine.high %v98_v1, %v102_v3 }
  0x77   :  { %1276 = vmatprep.subr.bf16.mxu0 %v1628_v15  ;;  %v94_v15 = vld [vmem:[%s2504_s1 + $0x230] sm:$0xff]  ;;  %v1749_v21 = vcombine.low %v147_v7, %v151_v8 }
  0x78   :  { %1801 = vmatmul.mubr.msk.bf16.vlgmr.msra.gmra.mxu1 %vm1066_vm2, %v1973_v2 }
  0x79   :  { %1345 = vmatpush1.bf16.msra.mxu1 %v1685_v16  ;;  %1376 = vmatprep.mubr.bf16.mxu1 %v1961_v61  ;;  %v130_v61 = vld [vmem:[%s2504_s1 + $0x350] sm:$0xff]  ;;  %v1750_v16 = vcombine.high %v147_v7, %v151_v8 }
  0x7a   :  { %1346 = vmatprep.subr.bf16.mxu1 %v1678_v19  ;;  %1277 = vmatpush1.bf16.msra.mxu0 %v1627_v20  ;;  %v1732_v40 = vcombine.high %v130_v61, %v134_v36  ;;  %v1731_v42 = vcombine.low %v130_v61, %v134_v36  ;;  %v143_v19 = vld [vmem:[%s2504_s1 + $0x3b8] sm:$0xff]  ;;  %v1692_v20 = vcombine.high %v90_v14, %v94_v15 }
  0x7b   :  { %1278 = vmatprep.subr.bf16.mxu0 %v1748_v23  ;;  %v1742_v22 = vcombine.high %v139_v18, %v143_v19  ;;  %v1691_v23 = vcombine.low %v90_v14, %v94_v15  ;;  %v1741_v28 = vcombine.low %v139_v18, %v143_v19  ;;  %v179_v36 = vld [vmem:[%s2504_s1 + $0x4d8] sm:$0xff] }
  0x7d   :  { %1347 = vmatpush1.bf16.msra.mxu1 %v1677_v24  ;;  %v131_v24 = vld [vmem:[%s2504_s1 + $0x358] sm:$0xff] }
  0x7e   :  { %1348 = vmatprep.subr.bf16.mxu1 %v1670_v29  ;;  %1279 = vmatpush2.bf16.msra.mxu0 %v1747_v30  ;;  %v187_v29 = vld [vmem:[%s2504_s1 + $0x518] sm:$0xff]  ;;  %v1734_v31 = vcombine.high %v131_v24, %v135_v27  ;;  %v1733_v61 = vcombine.low %v131_v24, %v135_v27 }
  0x7f   :  { %1280 = vmatprep.subr.bf16.mxu0 %v1740_v33  ;;  %v191_v30 = vld [vmem:[%s2504_s1 + $0x538] sm:$0xff] }
  0x80   :  { %v127_v33 = vld [vmem:[%s2504_s1 + $0x338] sm:$0xff]  ;;  %v1789_v38 = vcombine.low %v187_v29, %v191_v30 }
  0x81   :  { %1349 = vmatpush1.bf16.msra.mxu1 %v1669_v34  ;;  %v1790_v34 = vcombine.high %v187_v29, %v191_v30 }
  0x82   :  { %1350 = vmatprep.subr.bf16.mxu1 %v1662_v25  ;;  %1281 = vmatpush2.bf16.msra.mxu0 %v1739_v37  ;;  %v183_v25 = vld [vmem:[%s2504_s1 + $0x4f8] sm:$0xff]  ;;  %v1726_v37 = vcombine.high %v123_v32, %v127_v33 }
  0x83   :  { %1282 = vmatprep.subr.bf16.mxu0 %v1732_v40  ;;  %v1782_v40 = vcombine.high %v179_v36, %v183_v25 }
  0x85   :  { %1351 = vmatpush1.bf16.msra.mxu1 %v1661_v41  ;;  %v1725_v41 = vcombine.low %v123_v32, %v127_v33 }
  0x86   :  { %1352 = vmatprep.subr.bf16.mxu1 %v1654_v9  ;;  %1283 = vmatpush2.bf16.msra.mxu0 %v1731_v42  ;;  %v1781_v9 = vcombine.low %v179_v36, %v183_v25  ;;  %v111_v42 = vld [vmem:[%s2504_s1 + $0x2b8] sm:$0xff] }
  0x87   :  { %1284 = vmatprep.subr.bf16.mxu0 %v1724_v45  ;;  %v163_v45 = vld [vmem:[%s2504_s1 + $0x458] sm:$0xff] }
  0x89   :  { %1353 = vmatpush1.bf16.msra.mxu1 %v1653_v46  ;;  %v167_v46 = vld [vmem:[%s2504_s1 + $0x478] sm:$0xff] }
  0x8a   :  { %1354 = vmatprep.subr.bf16.mxu1 %v1646_v49  ;;  %1285 = vmatpush2.bf16.msra.mxu0 %v1723_v50  ;;  %v99_v49 = vld [vmem:[%s2504_s1 + $0x258] sm:$0xff]  ;;  %v1766_v51 = vcombine.high %v163_v45, %v167_v46  ;;  %v1765_v56 = vcombine.low %v163_v45, %v167_v46 }
  0x8b   :  { %1286 = vmatprep.subr.bf16.mxu0 %v1716_v53  ;;  %v103_v50 = vld [vmem:[%s2504_s1 + $0x278] sm:$0xff] }
  0x8c   :  { %v155_v53 = vld [vmem:[%s2504_s1 + $0x418] sm:$0xff]  ;;  %v1702_v55 = vcombine.high %v99_v49, %v103_v50  ;;  %v1701_v62 = vcombine.low %v99_v49, %v103_v50 }
  0x8d   :  { %1355 = vmatpush1.bf16.msra.mxu1 %v1645_v54  ;;  %v159_v54 = vld [vmem:[%s2504_s1 + $0x438] sm:$0xff] }
  0x8e   :  { %1356 = vmatprep.subr.bf16.mxu1 %v1638_v58  ;;  %1287 = vmatpush2.bf16.msra.mxu0 %v1715_v59  ;;  %v91_v58 = vld [vmem:[%s2504_s1 + $0x218] sm:$0xff]  ;;  %v1758_v60 = vcombine.high %v155_v53, %v159_v54 }
  0x8f   :  { %1288 = vmatprep.subr.bf16.mxu0 %v1708_v63  ;;  %v95_v59 = vld [vmem:[%s2504_s1 + $0x238] sm:$0xff] }
  0x90   :  { %v1694_v63 = vcombine.high %v91_v58, %v95_v59  ;;  %v1693_v1 = vcombine.low %v91_v58, %v95_v59 }
  0x91   :  { %1357 = vmatpush1.bf16.msra.mxu1 %v1637_v0  ;;  %v1757_v0 = vcombine.low %v155_v53, %v159_v54 }
  0x92   :  { %1358 = vmatprep.subr.bf16.mxu1 %v1630_v4  ;;  %1289 = vmatpush2.bf16.msra.mxu0 %v1707_v6 }
  0x93   :  { %1290 = vmatprep.subr.bf16.mxu0 %v1700_v10 }
  0x95   :  { %1359 = vmatpush1.bf16.msra.mxu1 %v1629_v13 }
  0x96   :  { %1360 = vmatprep.subr.bf16.mxu1 %v1750_v16  ;;  %1291 = vmatpush2.bf16.msra.mxu0 %v1699_v17 }
  0x97   :  { %1292 = vmatprep.subr.bf16.mxu0 %v1692_v20 }
  0x99   :  { %1361 = vmatpush2.bf16.msra.mxu1 %v1749_v21 }
  0x9a   :  { %1362 = vmatprep.subr.bf16.mxu1 %v1742_v22  ;;  %1293 = vmatpush2.bf16.msra.mxu0 %v1691_v23 }
  0x9b   :  { %1389 = vmatprep.subr.bf16.mxu0 %v2075_v11  ;;  %v115_v11 = vld [vmem:[%s2504_s1 + $0x2d8] sm:$0xff] }
  0x9c   :  { %v1718_v57 = vcombine.high %v115_v11, %v119_v39  ;;  %v1717_v44 = vcombine.low %v115_v11, %v119_v39 }
  0x9d   :  { %1363 = vmatpush2.bf16.msra.mxu1 %v1741_v28  ;;  %1295 = vmatmul.mubr.bf16.vlgmr.msra.gmra.mxu0 %v2110_v35 }
  0x9e   :  { %1364 = vmatprep.subr.bf16.mxu1 %v1734_v31  ;;  %1390 = vmatpush1.bf16.msra.mxu0 %v2078_v12  ;;  %v175_v12 = vld [vmem:[%s2504_s1 + $0x4b8] sm:$0xff] }
  0x9f   :  { %1417 = vmatprep.mubr.bf16.mxu0 %v1829_v5  ;;  %1391 = vmatprep.subr.bf16.mxu0 %v1790_v34  ;;  %v107_v5 = vld [vmem:[%s2504_s1 + $0x298] sm:$0xff]  ;;  %v1774_v43 = vcombine.high %v171_v26, %v175_v12  ;;  %v1773_v48 = vcombine.low %v171_v26, %v175_v12 }
  0xa0   :  { %v1710_v47 = vcombine.high %v107_v5, %v111_v42  ;;  %v1709_v52 = vcombine.low %v107_v5, %v111_v42 }
  0xa1   :  { %1365 = vmatpush2.bf16.msra.mxu1 %v1733_v61 }
  0xa2   :  { %1366 = vmatprep.subr.bf16.mxu1 %v1726_v37  ;;  %1392 = vmatpush1.bf16.msra.mxu0 %v1789_v38 }
  0xa3   :  { %1393 = vmatprep.subr.bf16.mxu0 %v1782_v40 }
  0xa5   :  { %1367 = vmatpush2.bf16.msra.mxu1 %v1725_v41 }
  0xa6   :  { %1368 = vmatprep.subr.bf16.mxu1 %v1718_v57  ;;  %1394 = vmatpush1.bf16.msra.mxu0 %v1781_v9 }
  0xa7   :  { %1395 = vmatprep.subr.bf16.mxu0 %v1774_v43 }
  0xa9   :  { %1369 = vmatpush2.bf16.msra.mxu1 %v1717_v44 }
  0xaa   :  { %1370 = vmatprep.subr.bf16.mxu1 %v1710_v47  ;;  %1396 = vmatpush1.bf16.msra.mxu0 %v1773_v48 }
  0xab   :  { %1397 = vmatprep.subr.bf16.mxu0 %v1766_v51 }
  0xad   :  { %1371 = vmatpush2.bf16.msra.mxu1 %v1709_v52 }
  0xae   :  { %1372 = vmatprep.subr.bf16.mxu1 %v1702_v55  ;;  %1398 = vmatpush1.bf16.msra.mxu0 %v1765_v56 }
  0xaf   :  { %1399 = vmatprep.subr.bf16.mxu0 %v1758_v60 }
  0xb1   :  { %1373 = vmatpush2.bf16.msra.mxu1 %v1701_v62 }
  0xb2   :  { %1374 = vmatprep.subr.bf16.mxu1 %v1694_v63  ;;  %1400 = vmatpush1.bf16.msra.mxu0 %v1757_v0 }
  0xb5   :  { %1375 = vmatpush2.bf16.msra.mxu1 %v1693_v1  ;;  %1802 = vmatmul.mubr.msk.bf16.vlgmr.msra.gmra.mxu0 %vm1066_vm2, %v1973_v2 }
  0xb8   :  { %1377 = vmatmul.mubr.bf16.vlgmr.msra.gmra.mxu1 %v2110_v35 }
  0xe0   :  { %v1173_v3 = vpop.f32.mrf.mxu1 }
  0xe2   :  { %v1175_v4 = vpop.f32.mrf.mxu1 }
  0xe4   :  { %v1177_v6 = vpop.f32.mrf.mxu1 }
  0xe6   :  { %v1178_v7 = vpop.f32.mrf.mxu1 }
 0x105   :  { %v1132_v8 = vpop.f32.mrf.mxu0 }
 0x106   :  { %v2438_v10 = vadd.f32 %v1173_v3, %v1132_v8 }
 0x107   :  { %v1134_v13 = vpop.f32.mrf.mxu0 }
 0x108   :  { %v2440_v14 = vadd.f32 %v1175_v4, %v1134_v13 }
 0x109   :  { %v1136_v15 = vpop.f32.mrf.mxu0 }
 0x10a   :  { %v1434_v61 = vadd.f32 %v2440_v14, %v2438_v10 }
 0x10b   :  { %v1137_v16 = vpop.f32.mrf.mxu0 }
 0x11d   :  { %v1255_v17 = vpop.f32.mrf.mxu0 }
 0x11f   :  { %v1257_v19 = vpop.f32.mrf.mxu0 }
 0x120   :  { %v1214_v18 = vpop.f32.mrf.mxu1 }
 0x121   :  { %v2442_v20 = vadd.f32 %v1255_v17, %v1214_v18  ;;  %v1259_v21 = vpop.f32.mrf.mxu0 }
 0x122   :  { %v1216_v2 = vpop.f32.mrf.mxu1  ;;  %v1515_v21 = vld [vmem:[%s2506_s2] sm:$0xff] }
 0x123   :  { %v2444_v35 = vadd.f32 %v1257_v19, %v1216_v2  ;;  %v1260_v23 = vpop.f32.mrf.mxu0  ;;  %v1435_v36 = vadd.f32 %v1434_v61, %v2442_v20 }
 0x124   :  { %v1218_v22 = vpop.f32.mrf.mxu1 }
 0x125   :  { %v1436_v37 = vadd.f32 %v1435_v36, %v2444_v35 }
 0x126   :  { %v1219_v24 = vpop.f32.mrf.mxu1 }
 0x138   :  { %v1337_v27 = vpop.f32.mrf.mxu1 }
 0x13a   :  { %v1339_v28 = vpop.f32.mrf.mxu1 }
 0x13c   :  { %v1341_v29 = vpop.f32.mrf.mxu1 }
 0x13e   :  { %v1342_v30 = vpop.f32.mrf.mxu1 }
 0x15d   :  { %v1296_v31 = vpop.f32.mrf.mxu0 }
 0x15e   :  { %v2449_v25 = vadd.f32 %v1337_v27, %v1296_v31  ;;  %v1517_v27 = vld [vmem:[%s2507_s3] sm:$0xff]  ;;  %v1563_v31 = vstv %s2508_s4 }
 0x15f   :  { %v1298_v32 = vpop.f32.mrf.mxu0 }
 0x160   :  { %v1437_v38 = vadd.f32 %v1436_v37, %v2449_v25  ;;  %v2453_v11 = vadd.f32 %v1339_v28, %v1298_v32 }
 0x161   :  { %v1300_v33 = vpop.f32.mrf.mxu0 }
 0x162   :  { %v1438_v12 = vadd.f32 %v1437_v38, %v2453_v11 }
 0x163   :  { %v1301_v34 = vpop.f32.mrf.mxu0 }
 0x175   :  { %v1419_v39 = vpop.f32.mrf.mxu0 }
 0x177   :  { %v1421_v41 = vpop.f32.mrf.mxu0 }
 0x178   :  { %v1378_v40 = vpop.f32.mrf.mxu1 }
 0x179   :  { %v2455_v26 = vadd.f32 %v1419_v39, %v1378_v40  ;;  %v1423_v9 = vpop.f32.mrf.mxu0 }
 0x17a   :  { %v1380_v57 = vpop.f32.mrf.mxu1 }
 0x17b   :  { %v1422_v5 = vadd.f32 %v1421_v41, %v1380_v57  ;;  %v1439_v42 = vadd.f32 %v1438_v12, %v2455_v26  ;;  %v1424_v44 = vpop.f32.mrf.mxu0 }
 0x17c   :  { %v1382_v43 = vpop.f32.mrf.mxu1 }
 0x17d   :  { %v1440_v45 = vadd.f32 %v1439_v42, %v1422_v5 }
 0x17e   :  { %v1383_v46 = vpop.f32.mrf.mxu1 }
 0x17f   :  { %1441 = vadd.xlane.f32.xlu0 %v1440_v45 }
 0x208   :  { %v1442_v47 = vpop.xlane.xlu0 %1441 }
 0x209   :  { %v1444_v48 = vmul.f32 0.0009765625, %v1442_v47 }
 0x20b   :  { %v1445_v49 = vsub.f32 %v2438_v10, %v1444_v48  ;;  %v1446_v50 = vsub.f32 %v2440_v14, %v1444_v48  ;;  %v1447_v51 = vsub.f32 %v2442_v20, %v1444_v48  ;;  %1475 = vst.msk [vmem:[#allocation3] sm:$0xff] %vm1474_vm3, %v1444_v48  ;;  %v1448_v52 = vsub.f32 %v2444_v35, %v1444_v48 }
 0x20c   :  { %v1449_v55 = vsub.f32 %v2449_v25, %v1444_v48  ;;  %v1450_v59 = vsub.f32 %v2453_v11, %v1444_v48  ;;  %v1451_v63 = vsub.f32 %v2455_v26, %v1444_v48  ;;  %v1452_v3 = vsub.f32 %v1422_v5, %v1444_v48 }
 0x20d   :  { %v1453_v53 = vmul.f32 %v1445_v49, %v1445_v49  ;;  %v1454_v54 = vmul.f32 %v1446_v50, %v1446_v50  ;;  %v1455_v56 = vmul.f32 %v1447_v51, %v1447_v51  ;;  %v1456_v60 = vmul.f32 %v1448_v52, %v1448_v52 }
 0x20e   :  { %v1457_v0 = vmul.f32 %v1449_v55, %v1449_v55  ;;  %v1458_v4 = vmul.f32 %v1450_v59, %v1450_v59  ;;  %v1459_v7 = vmul.f32 %v1451_v63, %v1451_v63  ;;  %v1460_v13 = vmul.f32 %v1452_v3, %v1452_v3 }
 0x20f   :  { %v1461_v58 = vadd.f32 %v1454_v54, %v1453_v53 }
 0x211   :  { %v1462_v62 = vadd.f32 %v1461_v58, %v1455_v56 }
 0x212   :  { %v1510_v24 = vld [vmem:[#allocation3] sm:$0xff] }
 0x213   :  { %v1463_v1 = vadd.f32 %v1462_v62, %v1456_v60 }
 0x215   :  { %v1464_v6 = vadd.f32 %v1463_v1, %v1457_v0 }
 0x217   :  { %v1465_v8 = vadd.f32 %v1464_v6, %v1458_v4 }
 0x219   :  { %v1466_v15 = vadd.f32 %v1465_v8, %v1459_v7 }
 0x21b   :  { %v1467_v16 = vadd.f32 %v1466_v15, %v1460_v13 }
 0x21d   :  { %1468 = vadd.xlane.f32.xlu0 %v1467_v16 }
 0x2a6   :  { %v1469_v17 = vpop.xlane.xlu0 %1468 }
 0x2a7   :  { %1476 = vst.msk [vmem:[#allocation4] sm:$0xff] %vm1474_vm3, %v1469_v17 }
 0x2ae   :  { %v1511_v18 = vld [vmem:[#allocation4] sm:$0xff] }
 0x2af   :  { %v1512_v19 = vmul.f32 0.0009765625, %v1511_v18 }
 0x2b1   :  { %v1513_v2 = vadd.f32 1e-05, %v1512_v19 }
 0x2b3   :  { %1826 = vrsqrt.f32 %v1513_v2 }
 0x2c0   :  { %v1827_v22 = vpop.eup %1826 }
 0x2c1   :  { %v1516_v23 = vmul.f32 %v1827_v22, %v1515_v21 }
 0x2c3   :  { %1531 = vperm.xlu1 %1813, %v1516_v23   ;;  %v1518_v28 = vmul.f32 %v1516_v23, %v1510_v24 }
 0x2c5   :  { %v1519_v29 = vsub.f32 %v1517_v27, %v1518_v28 }
 0x2c7   :  { %1544 = vperm.xlu1 %1813, %v1519_v29  }
 0x33e   :  { %v1532_v30 = vpop.permute.xlu1 %1531 }
 0x33f   :  { %v1534_v32 = vmul.f32 %v1532_v30, %v2438_v10  ;;  %v1535_v33 = vmul.f32 %v1532_v30, %v2440_v14  ;;  %v1536_v34 = vmul.f32 %v1532_v30, %v2442_v20  ;;  %v1537_v61 = vmul.f32 %v1532_v30, %v2444_v35 }
 0x340   :  { %v1538_v36 = vmul.f32 %v1532_v30, %v2449_v25  ;;  %v1539_v37 = vmul.f32 %v1532_v30, %v2453_v11  ;;  %v1540_v38 = vmul.f32 %v1532_v30, %v2455_v26  ;;  %v1541_v39 = vmul.f32 %v1532_v30, %v1422_v5 }
 0x342   :  { %v1545_v40 = vpop.permute.xlu1 %1544 }
 0x343   :  { %v1547_v41 = vadd.f32 %v1545_v40, %v1534_v32  ;;  %v1548_v12 = vadd.f32 %v1545_v40, %v1535_v33  ;;  %v1549_v57 = vadd.f32 %v1545_v40, %v1536_v34  ;;  %v1550_v9 = vadd.f32 %v1545_v40, %v1537_v61 }
 0x344   :  { %v1551_v42 = vadd.f32 %v1545_v40, %v1538_v36  ;;  %v1552_v10 = vadd.f32 %v1545_v40, %v1539_v37  ;;  %v1553_v43 = vadd.f32 %v1545_v40, %v1540_v38  ;;  %v1554_v14 = vadd.f32 %v1545_v40, %v1541_v39 }
 0x345   :  { %vm1555_vm4 = vcmp.ge.f32.partialorder %v1547_v41, 0.0  ;;  %vm1556_vm5 = vcmp.ge.f32.partialorder %v1548_v12, 0.0  ;;  %vm1557_vm6 = vcmp.ge.f32.partialorder %v1549_v57, 0.0  ;;  %vm1558_vm7 = vcmp.ge.f32.partialorder %v1550_v9, 0.0 }
 0x346   :  { %vm1559_vm8 = vcmp.ge.f32.partialorder %v1551_v42, 0.0  ;;  %vm1560_vm9 = vcmp.ge.f32.partialorder %v1552_v10, 0.0  ;;  %vm1561_vm10 = vcmp.ge.f32.partialorder %v1553_v43, 0.0  ;;  %vm1562_vm11 = vcmp.ge.f32.partialorder %v1554_v14, 0.0 }
 0x347   :  { %v1564_v20 = vmul.f32 %v1563_v31, %v1547_v41  ;;  %v1565_v35 = vmul.f32 %v1563_v31, %v1548_v12  ;;  %v1566_v25 = vmul.f32 %v1563_v31, %v1549_v57  ;;  %v1567_v11 = vmul.f32 %v1563_v31, %v1550_v9 }
 0x348   :  { %v1568_v26 = vmul.f32 %v1563_v31, %v1551_v42  ;;  %v1569_v5 = vmul.f32 %v1563_v31, %v1552_v10  ;;  %v1570_v44 = vmul.f32 %v1563_v31, %v1553_v43  ;;  %v1571_v45 = vmul.f32 %v1563_v31, %v1554_v14 }
 0x349   :  { %v1572_v46 = vsel %vm1555_vm4, %v1547_v41, %v1564_v20  ;;  %v1573_v47 = vsel %vm1556_vm5, %v1548_v12, %v1565_v35  ;;  %v1574_v48 = vsel %vm1557_vm6, %v1549_v57, %v1566_v25  ;;  %v1575_v49 = vsel %vm1558_vm7, %v1550_v9, %v1567_v11 }
 0x34a   :  { %v1576_v50 = vsel %vm1559_vm8, %v1551_v42, %v1568_v26  ;;  %v1577_v51 = vsel %vm1560_vm9, %v1552_v10, %v1569_v5  ;;  %v1578_v52 = vsel %vm1561_vm10, %v1553_v43, %v1570_v44  ;;  %v1579_v53 = vsel %vm1562_vm11, %v1554_v14, %v1571_v45 }
 0x34b   :  { %v1807_v54 = vpack.c.bf16 %v1573_v47, %v1572_v46  ;;  %v1808_v55 = vpack.c.bf16 %v1575_v49, %v1574_v48  ;;  %v1809_v56 = vpack.c.bf16 %v1577_v51, %v1576_v50  ;;  %v1810_v58 = vpack.c.bf16 %v1579_v53, %v1578_v52 }
 0x34d   :  { %1612 = vst [vmem:[%s2509_s5] sm:$0xff] %v1807_v54  ;;  %1613 = vst [vmem:[%s2509_s5 + $0x8] sm:$0xff] %v1808_v55 }
 0x34e   :  { %1614 = vst [vmem:[%s2509_s5 + $0x10] sm:$0xff] %v1809_v56  ;;  %1615 = vst [vmem:[%s2509_s5 + $0x18] sm:$0xff] %v1810_v58 }

// kernel: extract_feature_forward.4
= control target key start
LH: loop header
LB: loop body
LE: loop exit
PB: predicated region body
PF: predicated region fallthrough
CT: control target
= control target key end

     0   :  { %vm677_vm0 = vcmask 719872   ;;  %vm681_vm1 = vcmask 1043456   ;;  %vm918_vm2 = vcmask 7168   ;;  %s1668_s1 = inlined_call_operand.vmem [shape: bf16[216,1024], index: 1, kind: input, shape index: {}]   ;;  %s1669_s0 = inlined_call_operand.vmem [shape: bf16[8,216], index: 0, kind: input, shape index: {}]   ;;  %s1670_s2 = inlined_call_operand.vmem [shape: f32[8,1], index: 2, kind: input, shape index: {}]   ;;  %s1671_s3 = inlined_call_operand.vmem [shape: f32[8,1], index: 3, kind: input, shape index: {}]   ;;  %s1672_s4 = inlined_call_operand.<no memory space> [shape: f32[1], index: 4, kind: input, shape index: {}]   ;;  %s1673_s5 = inlined_call_operand.vmem [shape: bf16[8,1024], index: 5, kind: output, shape index: {}]  }
   0x1   :  { %v79_v0 = vld [vmem:[%s1668_s1 + $0x1c0] sm:$0xff]  ;;  %v80_v2 = vld [vmem:[%s1668_s1 + $0x1c8] sm:$0xff] }
   0x2   :  { %v83_v1 = vld [vmem:[%s1668_s1 + $0x1e0] sm:$0xff]  ;;  %v84_v4 = vld [vmem:[%s1668_s1 + $0x1e8] sm:$0xff] }
   0x3   :  { %v1123_v3 = vcombine.high %v79_v0, %v83_v1  ;;  %v1122_v5 = vcombine.low %v79_v0, %v83_v1  ;;  %v71_v6 = vld [vmem:[%s1668_s1 + $0x180] sm:$0xff]  ;;  %v1125_v8 = vcombine.high %v80_v2, %v84_v4  ;;  %v1124_v9 = vcombine.low %v80_v2, %v84_v4  ;;  %v72_v11 = vld [vmem:[%s1668_s1 + $0x188] sm:$0xff] }
   0x4   :  { %v75_v7 = vld [vmem:[%s1668_s1 + $0x1a0] sm:$0xff]  ;;  %v76_v12 = vld [vmem:[%s1668_s1 + $0x1a8] sm:$0xff] }
   0x5   :  { %v1115_v10 = vcombine.high %v71_v6, %v75_v7  ;;  %v63_v13 = vld [vmem:[%s1668_s1 + $0x140] sm:$0xff]  ;;  %706 = vmatprep.subr.bf16.mxu0 %v1123_v3  ;;  %v1117_v14 = vcombine.high %v72_v11, %v76_v12  ;;  %v64_v16 = vld [vmem:[%s1668_s1 + $0x148] sm:$0xff]  ;;  %747 = vmatprep.subr.bf16.mxu1 %v1125_v8  ;;  %v1114_v18 = vcombine.low %v71_v6, %v75_v7 }
   0x6   :  { %v67_v15 = vld [vmem:[%s1668_s1 + $0x160] sm:$0xff]  ;;  %v68_v17 = vld [vmem:[%s1668_s1 + $0x168] sm:$0xff]  ;;  %707 = vmatpush1.bf16.msra.mxu0 %v1122_v5  ;;  %748 = vmatpush1.bf16.msra.mxu1 %v1124_v9  ;;  %v1116_v19 = vcombine.low %v72_v11, %v76_v12 }
   0x7   :  { %708 = vmatprep.subr.bf16.mxu0 %v1115_v10  ;;  %v1107_v20 = vcombine.high %v63_v13, %v67_v15  ;;  %749 = vmatprep.subr.bf16.mxu1 %v1117_v14  ;;  %v1109_v21 = vcombine.high %v64_v16, %v68_v17  ;;  %v55_v22 = vld [vmem:[%s1668_s1 + $0x100] sm:$0xff]  ;;  %v56_v24 = vld [vmem:[%s1668_s1 + $0x108] sm:$0xff]  ;;  %v1106_v26 = vcombine.low %v63_v13, %v67_v15 }
   0x8   :  { %v59_v23 = vld [vmem:[%s1668_s1 + $0x120] sm:$0xff]  ;;  %v60_v25 = vld [vmem:[%s1668_s1 + $0x128] sm:$0xff]  ;;  %v1108_v27 = vcombine.low %v64_v16, %v68_v17 }
   0x9   :  { %v1099_v28 = vcombine.high %v55_v22, %v59_v23  ;;  %v1101_v29 = vcombine.high %v56_v24, %v60_v25  ;;  %v47_v30 = vld [vmem:[%s1668_s1 + $0xc0] sm:$0xff]  ;;  %v48_v32 = vld [vmem:[%s1668_s1 + $0xc8] sm:$0xff]  ;;  %v1098_v34 = vcombine.low %v55_v22, %v59_v23  ;;  %v1100_v35 = vcombine.low %v56_v24, %v60_v25 }
   0xa   :  { %709 = vmatpush1.bf16.msra.mxu0 %v1114_v18  ;;  %750 = vmatpush1.bf16.msra.mxu1 %v1116_v19  ;;  %v51_v31 = vld [vmem:[%s1668_s1 + $0xe0] sm:$0xff]  ;;  %v52_v33 = vld [vmem:[%s1668_s1 + $0xe8] sm:$0xff] }
   0xb   :  { %710 = vmatprep.subr.bf16.mxu0 %v1107_v20  ;;  %751 = vmatprep.subr.bf16.mxu1 %v1109_v21  ;;  %v1091_v36 = vcombine.high %v47_v30, %v51_v31  ;;  %v1093_v37 = vcombine.high %v48_v32, %v52_v33  ;;  %v39_v38 = vld [vmem:[%s1668_s1 + $0x80] sm:$0xff]  ;;  %v40_v40 = vld [vmem:[%s1668_s1 + $0x88] sm:$0xff]  ;;  %v1090_v42 = vcombine.low %v47_v30, %v51_v31 }
   0xc   :  { %v43_v39 = vld [vmem:[%s1668_s1 + $0xa0] sm:$0xff]  ;;  %v44_v41 = vld [vmem:[%s1668_s1 + $0xa8] sm:$0xff]  ;;  %v1092_v43 = vcombine.low %v48_v32, %v52_v33 }
   0xd   :  { %v1083_v44 = vcombine.high %v39_v38, %v43_v39  ;;  %v1085_v45 = vcombine.high %v40_v40, %v44_v41  ;;  %v31_v46 = vld [vmem:[%s1668_s1 + $0x40] sm:$0xff]  ;;  %v32_v49 = vld [vmem:[%s1668_s1 + $0x48] sm:$0xff]  ;;  %v1082_v52 = vcombine.low %v39_v38, %v43_v39  ;;  %v1084_v53 = vcombine.low %v40_v40, %v44_v41 }
   0xe   :  { %711 = vmatpush1.bf16.msra.mxu0 %v1106_v26  ;;  %752 = vmatpush1.bf16.msra.mxu1 %v1108_v27  ;;  %v35_v47 = vld [vmem:[%s1668_s1 + $0x60] sm:$0xff]  ;;  %v36_v50 = vld [vmem:[%s1668_s1 + $0x68] sm:$0xff] }
   0xf   :  { %712 = vmatprep.subr.bf16.mxu0 %v1099_v28  ;;  %753 = vmatprep.subr.bf16.mxu1 %v1101_v29  ;;  %v1321_v48 = vld [vmem:[%s1669_s0] sm:$0xff]  ;;  %v1075_v54 = vcombine.high %v31_v46, %v35_v47  ;;  %v1077_v55 = vcombine.high %v32_v49, %v36_v50  ;;  %v24_v58 = vld [vmem:[%s1668_s1 + $0x8] sm:$0xff]  ;;  %v1074_v60 = vcombine.low %v31_v46, %v35_v47 }
  0x10   :  { %v1331_v51 = vcombine.high %v1321_v48, %v1321_v48  ;;  %v23_v56 = vld [vmem:[%s1668_s1] sm:$0xff]  ;;  %v28_v59 = vld [vmem:[%s1668_s1 + $0x28] sm:$0xff]  ;;  %v1076_v61 = vcombine.low %v32_v49, %v36_v50  ;;  %v81_v49 = vld [vmem:[%s1668_s1 + $0x1d0] sm:$0xff] }
  0x11   :  { %v27_v57 = vld [vmem:[%s1668_s1 + $0x20] sm:$0xff]  ;;  %v1069_v63 = vcombine.high %v24_v58, %v28_v59  ;;  %v128_v1 = vld [vmem:[%s1668_s1 + $0x348] sm:$0xff]  ;;  %v1068_v3 = vcombine.low %v24_v58, %v28_v59  ;;  %v85_v50 = vld [vmem:[%s1668_s1 + $0x1f0] sm:$0xff] }
  0x12   :  { %713 = vmatpush1.bf16.msra.mxu0 %v1098_v34  ;;  %754 = vmatpush1.bf16.msra.mxu1 %v1100_v35  ;;  %v1067_v62 = vcombine.high %v23_v56, %v27_v57  ;;  %v127_v0 = vld [vmem:[%s1668_s1 + $0x340] sm:$0xff]  ;;  %v1066_v2 = vcombine.low %v23_v56, %v27_v57  ;;  %v1173_v6 = vcombine.high %v128_v1, %v128_v1  ;;  %v120_v10 = vld [vmem:[%s1668_s1 + $0x308] sm:$0xff]  ;;  %v73_v58 = vld [vmem:[%s1668_s1 + $0x190] sm:$0xff] }
  0x13   :  { %714 = vmatprep.subr.bf16.mxu0 %v1091_v36  ;;  %755 = vmatprep.subr.bf16.mxu1 %v1093_v37  ;;  %v1171_v4 = vcombine.high %v127_v0, %v127_v0  ;;  %v1170_v5 = vcombine.low %v127_v0, %v127_v0  ;;  %v1172_v7 = vcombine.low %v128_v1, %v128_v1  ;;  %v119_v8 = vld [vmem:[%s1668_s1 + $0x300] sm:$0xff]  ;;  %v124_v11 = vld [vmem:[%s1668_s1 + $0x328] sm:$0xff]  ;;  %v77_v59 = vld [vmem:[%s1668_s1 + $0x1b0] sm:$0xff] }
  0x14   :  { %1179 = vmatprep.mubr.msk.bf16.mxu0 %vm677_vm0, %v1331_v51  ;;  %1181 = vmatprep.mubr.msk.bf16.mxu1 %vm677_vm0, %v1331_v51  ;;  %v123_v9 = vld [vmem:[%s1668_s1 + $0x320] sm:$0xff]  ;;  %v1165_v15 = vcombine.high %v120_v10, %v124_v11  ;;  %v112_v18 = vld [vmem:[%s1668_s1 + $0x2c8] sm:$0xff]  ;;  %v1164_v21 = vcombine.low %v120_v10, %v124_v11  ;;  %v1127_v56 = vcombine.high %v81_v49, %v85_v50  ;;  %v57_v10 = vld [vmem:[%s1668_s1 + $0x110] sm:$0xff] }
  0x15   :  { %v683_v12 = vsel %vm681_vm1, %v1170_v5, 0  ;;  %v1163_v13 = vcombine.high %v119_v8, %v123_v9  ;;  %v689_v14 = vsel %vm681_vm1, %v1172_v7, 0  ;;  %v111_v16 = vld [vmem:[%s1668_s1 + $0x2c0] sm:$0xff]  ;;  %v116_v19 = vld [vmem:[%s1668_s1 + $0x2e8] sm:$0xff]  ;;  %v1162_v20 = vcombine.low %v119_v8, %v123_v9  ;;  %v70_v5 = vld [vmem:[%s1668_s1 + $0x178] sm:$0xff] }
  0x16   :  { %715 = vmatpush1.bf16.msra.mxu0 %v1090_v42  ;;  %756 = vmatpush1.bf16.msra.mxu1 %v1092_v43  ;;  %v115_v17 = vld [vmem:[%s1668_s1 + $0x2e0] sm:$0xff]  ;;  %v1157_v23 = vcombine.high %v112_v18, %v116_v19  ;;  %v104_v26 = vld [vmem:[%s1668_s1 + $0x288] sm:$0xff]  ;;  %v1156_v29 = vcombine.low %v112_v18, %v116_v19  ;;  %v1119_v1 = vcombine.high %v73_v58, %v77_v59  ;;  %v61_v11 = vld [vmem:[%s1668_s1 + $0x130] sm:$0xff] }
  0x17   :  { %716 = vmatprep.subr.bf16.mxu0 %v1083_v44  ;;  %757 = vmatprep.subr.bf16.mxu1 %v1085_v45  ;;  %v1155_v22 = vcombine.high %v111_v16, %v115_v17  ;;  %v103_v24 = vld [vmem:[%s1668_s1 + $0x280] sm:$0xff]  ;;  %v108_v27 = vld [vmem:[%s1668_s1 + $0x2a8] sm:$0xff]  ;;  %v1154_v28 = vcombine.low %v111_v16, %v115_v17  ;;  %v1103_v16 = vcombine.high %v57_v10, %v61_v11  ;;  %v49_v18 = vld [vmem:[%s1668_s1 + $0xd0] sm:$0xff] }
  0x18   :  { %v107_v25 = vld [vmem:[%s1668_s1 + $0x2a0] sm:$0xff]  ;;  %v1149_v31 = vcombine.high %v104_v26, %v108_v27  ;;  %v96_v34 = vld [vmem:[%s1668_s1 + $0x248] sm:$0xff]  ;;  %v1148_v37 = vcombine.low %v104_v26, %v108_v27  ;;  %v53_v19 = vld [vmem:[%s1668_s1 + $0xf0] sm:$0xff] }
  0x19   :  { %v1147_v30 = vcombine.high %v103_v24, %v107_v25  ;;  %v95_v32 = vld [vmem:[%s1668_s1 + $0x240] sm:$0xff]  ;;  %v100_v35 = vld [vmem:[%s1668_s1 + $0x268] sm:$0xff]  ;;  %v1146_v36 = vcombine.low %v103_v24, %v107_v25  ;;  %v41_v25 = vld [vmem:[%s1668_s1 + $0x90] sm:$0xff] }
  0x1a   :  { %717 = vmatpush1.bf16.msra.mxu0 %v1082_v52  ;;  %758 = vmatpush1.bf16.msra.mxu1 %v1084_v53  ;;  %v99_v33 = vld [vmem:[%s1668_s1 + $0x260] sm:$0xff]  ;;  %v1141_v39 = vcombine.high %v96_v34, %v100_v35  ;;  %v88_v42 = vld [vmem:[%s1668_s1 + $0x208] sm:$0xff]  ;;  %v1140_v45 = vcombine.low %v96_v34, %v100_v35  ;;  %v82_v52 = vld [vmem:[%s1668_s1 + $0x1d8] sm:$0xff] }
  0x1b   :  { %718 = vmatprep.subr.bf16.mxu0 %v1075_v54  ;;  %759 = vmatprep.subr.bf16.mxu1 %v1077_v55  ;;  %v1139_v38 = vcombine.high %v95_v32, %v99_v33  ;;  %v87_v40 = vld [vmem:[%s1668_s1 + $0x200] sm:$0xff]  ;;  %v92_v43 = vld [vmem:[%s1668_s1 + $0x228] sm:$0xff]  ;;  %v1138_v44 = vcombine.low %v95_v32, %v99_v33  ;;  %v86_v53 = vld [vmem:[%s1668_s1 + $0x1f8] sm:$0xff] }
  0x1c   :  { %v91_v41 = vld [vmem:[%s1668_s1 + $0x220] sm:$0xff]  ;;  %v1133_v47 = vcombine.high %v88_v42, %v92_v43  ;;  %v1132_v55 = vcombine.low %v88_v42, %v92_v43  ;;  %v1129_v57 = vcombine.high %v82_v52, %v86_v53  ;;  %v1128_v0 = vcombine.low %v82_v52, %v86_v53  ;;  %v45_v26 = vld [vmem:[%s1668_s1 + $0xb0] sm:$0xff]  ;;  %v42_v27 = vld [vmem:[%s1668_s1 + $0x98] sm:$0xff] }
  0x1d   :  { %v1131_v46 = vcombine.high %v87_v40, %v91_v41  ;;  %v1130_v54 = vcombine.low %v87_v40, %v91_v41  ;;  %v33_v33 = vld [vmem:[%s1668_s1 + $0x50] sm:$0xff]  ;;  %v34_v35 = vld [vmem:[%s1668_s1 + $0x58] sm:$0xff] }
  0x1e   :  { %719 = vmatpush1.bf16.msra.mxu0 %v1074_v60  ;;  %760 = vmatpush1.bf16.msra.mxu1 %v1076_v61  ;;  %v1439_v60 = vcombine.low %v1321_v48, %v1321_v48  ;;  %v74_v61 = vld [vmem:[%s1668_s1 + $0x198] sm:$0xff]  ;;  %v65_v48 = vld [vmem:[%s1668_s1 + $0x150] sm:$0xff] }
  0x1f   :  { %720 = vmatprep.subr.bf16.mxu0 %v1067_v62  ;;  %761 = vmatprep.subr.bf16.mxu1 %v1069_v63  ;;  %v78_v62 = vld [vmem:[%s1668_s1 + $0x1b8] sm:$0xff]  ;;  %v1126_v63 = vcombine.low %v81_v49, %v85_v50  ;;  %v37_v34 = vld [vmem:[%s1668_s1 + $0x70] sm:$0xff] }
  0x20   :  { %v1120_v7 = vcombine.low %v74_v61, %v78_v62  ;;  %v25_v41 = vld [vmem:[%s1668_s1 + $0x10] sm:$0xff]  ;;  %v26_v43 = vld [vmem:[%s1668_s1 + $0x18] sm:$0xff] }
  0x21   :  { %v29_v42 = vld [vmem:[%s1668_s1 + $0x30] sm:$0xff]  ;;  %v130_v52 = vld [vmem:[%s1668_s1 + $0x358] sm:$0xff] }
  0x22   :  { %721 = vmatpush1.bf16.msra.mxu0 %v1066_v2  ;;  %762 = vmatpush1.bf16.msra.mxu1 %v1068_v3  ;;  %v1121_v2 = vcombine.high %v74_v61, %v78_v62  ;;  %v69_v3 = vld [vmem:[%s1668_s1 + $0x170] sm:$0xff]  ;;  %v1070_v53 = vcombine.low %v25_v41, %v29_v42  ;;  %v122_v62 = vld [vmem:[%s1668_s1 + $0x318] sm:$0xff] }
  0x23   :  { %1178 = vmatprep.subr.msk.bf16.mxu0 %vm681_vm1, %v1171_v4  ;;  %1180 = vmatprep.subr.msk.bf16.mxu1 %vm681_vm1, %v1173_v6  ;;  %v66_v4 = vld [vmem:[%s1668_s1 + $0x158] sm:$0xff]  ;;  %v1118_v6 = vcombine.low %v73_v58, %v77_v59  ;;  %v1111_v8 = vcombine.high %v65_v48, %v69_v3  ;;  %v129_v50 = vld [vmem:[%s1668_s1 + $0x350] sm:$0xff]  ;;  %v1176_v58 = vcombine.low %v130_v52, %v130_v52 }
  0x24   :  { %v1113_v9 = vcombine.high %v66_v4, %v70_v5  ;;  %v121_v59 = vld [vmem:[%s1668_s1 + $0x310] sm:$0xff] }
  0x25   :  { %v125_v61 = vld [vmem:[%s1668_s1 + $0x330] sm:$0xff] }
  0x26   :  { %727 = vmatpush2.bf16.msra.mxu0 %v683_v12  ;;  %768 = vmatpush2.bf16.msra.mxu1 %v689_v14  ;;  %v58_v12 = vld [vmem:[%s1668_s1 + $0x118] sm:$0xff]  ;;  %v1110_v14 = vcombine.low %v65_v48, %v69_v3  ;;  %v113_v3 = vld [vmem:[%s1668_s1 + $0x2d0] sm:$0xff] }
  0x27   :  { %728 = vmatprep.subr.bf16.mxu0 %v1163_v13  ;;  %769 = vmatprep.subr.bf16.mxu1 %v1165_v15  ;;  %v62_v13 = vld [vmem:[%s1668_s1 + $0x138] sm:$0xff]  ;;  %v1112_v15 = vcombine.low %v66_v4, %v70_v5  ;;  %v117_v4 = vld [vmem:[%s1668_s1 + $0x2f0] sm:$0xff] }
  0x28   :  { %v1105_v17 = vcombine.high %v58_v12, %v62_v13  ;;  %v114_v5 = vld [vmem:[%s1668_s1 + $0x2d8] sm:$0xff] }
  0x2a   :  { %729 = vmatpush2.bf16.msra.mxu0 %v1162_v20  ;;  %770 = vmatpush2.bf16.msra.mxu1 %v1164_v21  ;;  %v54_v20 = vld [vmem:[%s1668_s1 + $0xf8] sm:$0xff]  ;;  %v1102_v21 = vcombine.low %v57_v10, %v61_v11  ;;  %v105_v11 = vld [vmem:[%s1668_s1 + $0x290] sm:$0xff] }
  0x2b   :  { %730 = vmatprep.subr.bf16.mxu0 %v1155_v22  ;;  %771 = vmatprep.subr.bf16.mxu1 %v1157_v23  ;;  %v1104_v22 = vcombine.low %v58_v12, %v62_v13  ;;  %v1095_v23 = vcombine.high %v49_v18, %v53_v19  ;;  %v109_v12 = vld [vmem:[%s1668_s1 + $0x2b0] sm:$0xff]  ;;  %v106_v13 = vld [vmem:[%s1668_s1 + $0x298] sm:$0xff] }
  0x2e   :  { %731 = vmatpush2.bf16.msra.mxu0 %v1154_v28  ;;  %772 = vmatpush2.bf16.msra.mxu1 %v1156_v29  ;;  %v46_v28 = vld [vmem:[%s1668_s1 + $0xb8] sm:$0xff]  ;;  %v1094_v29 = vcombine.low %v49_v18, %v53_v19  ;;  %v97_v19 = vld [vmem:[%s1668_s1 + $0x250] sm:$0xff] }
  0x2f   :  { %732 = vmatprep.subr.bf16.mxu0 %v1147_v30  ;;  %773 = vmatprep.subr.bf16.mxu1 %v1149_v31  ;;  %v1087_v31 = vcombine.high %v41_v25, %v45_v26  ;;  %v1089_v32 = vcombine.high %v42_v27, %v46_v28 }
  0x32   :  { %733 = vmatpush2.bf16.msra.mxu0 %v1146_v36  ;;  %774 = vmatpush2.bf16.msra.mxu1 %v1148_v37  ;;  %v38_v36 = vld [vmem:[%s1668_s1 + $0x78] sm:$0xff]  ;;  %v1086_v37 = vcombine.low %v41_v25, %v45_v26  ;;  %v89_v26 = vld [vmem:[%s1668_s1 + $0x210] sm:$0xff] }
  0x33   :  { %734 = vmatprep.subr.bf16.mxu0 %v1139_v38  ;;  %775 = vmatprep.subr.bf16.mxu1 %v1141_v39  ;;  %v1088_v38 = vcombine.low %v42_v27, %v46_v28  ;;  %v1079_v39 = vcombine.high %v33_v33, %v37_v34  ;;  %v1081_v40 = vcombine.high %v34_v35, %v38_v36  ;;  %v93_v27 = vld [vmem:[%s1668_s1 + $0x230] sm:$0xff]  ;;  %v90_v28 = vld [vmem:[%s1668_s1 + $0x218] sm:$0xff] }
  0x36   :  { %735 = vmatpush2.bf16.msra.mxu0 %v1138_v44  ;;  %776 = vmatpush2.bf16.msra.mxu1 %v1140_v45  ;;  %v30_v44 = vld [vmem:[%s1668_s1 + $0x38] sm:$0xff]  ;;  %v1078_v45 = vcombine.low %v33_v33, %v37_v34  ;;  %v1134_v34 = vcombine.low %v89_v26, %v93_v27 }
  0x37   :  { %736 = vmatprep.subr.bf16.mxu0 %v1131_v46  ;;  %777 = vmatprep.subr.bf16.mxu1 %v1133_v47  ;;  %v1080_v46 = vcombine.low %v34_v35, %v38_v36  ;;  %v1071_v47 = vcombine.high %v25_v41, %v29_v42  ;;  %v1073_v49 = vcombine.high %v26_v43, %v30_v44 }
  0x3a   :  { %737 = vmatpush2.bf16.msra.mxu0 %v1130_v54  ;;  %778 = vmatpush2.bf16.msra.mxu1 %v1132_v55  ;;  %v1072_v54 = vcombine.low %v26_v43, %v30_v44  ;;  %v1175_v55 = vcombine.high %v129_v50, %v129_v50 }
  0x3b   :  { %788 = vmatprep.subr.bf16.mxu0 %v1127_v56  ;;  %829 = vmatprep.subr.bf16.mxu1 %v1129_v57  ;;  %v1174_v56 = vcombine.low %v129_v50, %v129_v50  ;;  %v1177_v57 = vcombine.high %v130_v52, %v130_v52 }
  0x3d   :  { %739 = vmatmul.mubr.bf16.vlgmr.msra.gmra.mxu0 %v1439_v60  ;;  %780 = vmatmul.mubr.bf16.vlgmr.msra.gmra.mxu1 %v1439_v60 }
  0x3e   :  { %789 = vmatpush1.bf16.msra.mxu0 %v1126_v63  ;;  %830 = vmatpush1.bf16.msra.mxu1 %v1128_v0  ;;  %v126_v63 = vld [vmem:[%s1668_s1 + $0x338] sm:$0xff]  ;;  %v695_v0 = vsel %vm681_vm1, %v1174_v56, 0 }
  0x3f   :  { %790 = vmatprep.subr.bf16.mxu0 %v1119_v1  ;;  %831 = vmatprep.subr.bf16.mxu1 %v1121_v2  ;;  %v1167_v1 = vcombine.high %v121_v59, %v125_v61  ;;  %v701_v2 = vsel %vm681_vm1, %v1176_v58, 0  ;;  %v1169_v48 = vcombine.high %v122_v62, %v126_v63 }
  0x40   :  { %1183 = vmatprep.mubr.msk.bf16.mxu0 %vm677_vm0, %v1331_v51  ;;  %1185 = vmatprep.mubr.msk.bf16.mxu1 %vm677_vm0, %v1331_v51  ;;  %v50_v51 = vld [vmem:[%s1668_s1 + $0xd8] sm:$0xff] }
  0x41   :  { %v1097_v24 = vcombine.high %v50_v51, %v54_v20  ;;  %v1096_v30 = vcombine.low %v50_v51, %v54_v20  ;;  %v101_v51 = vld [vmem:[%s1668_s1 + $0x270] sm:$0xff]  ;;  %v98_v20 = vld [vmem:[%s1668_s1 + $0x258] sm:$0xff] }
  0x42   :  { %791 = vmatpush1.bf16.msra.mxu0 %v1118_v6  ;;  %832 = vmatpush1.bf16.msra.mxu1 %v1120_v7  ;;  %v118_v6 = vld [vmem:[%s1668_s1 + $0x2f8] sm:$0xff]  ;;  %v1166_v7 = vcombine.low %v121_v59, %v125_v61 }
  0x43   :  { %792 = vmatprep.subr.bf16.mxu0 %v1111_v8  ;;  %833 = vmatprep.subr.bf16.mxu1 %v1113_v9  ;;  %v1168_v8 = vcombine.low %v122_v62, %v126_v63  ;;  %v1159_v9 = vcombine.high %v113_v3, %v117_v4  ;;  %v1161_v10 = vcombine.high %v114_v5, %v118_v6 }
  0x46   :  { %793 = vmatpush1.bf16.msra.mxu0 %v1110_v14  ;;  %834 = vmatpush1.bf16.msra.mxu1 %v1112_v15  ;;  %v110_v14 = vld [vmem:[%s1668_s1 + $0x2b8] sm:$0xff]  ;;  %v1158_v15 = vcombine.low %v113_v3, %v117_v4 }
  0x47   :  { %794 = vmatprep.subr.bf16.mxu0 %v1103_v16  ;;  %835 = vmatprep.subr.bf16.mxu1 %v1105_v17  ;;  %v1160_v16 = vcombine.low %v114_v5, %v118_v6  ;;  %v1151_v17 = vcombine.high %v105_v11, %v109_v12  ;;  %v1153_v18 = vcombine.high %v106_v13, %v110_v14 }
  0x4a   :  { %795 = vmatpush1.bf16.msra.mxu0 %v1102_v21  ;;  %836 = vmatpush1.bf16.msra.mxu1 %v1104_v22  ;;  %v102_v21 = vld [vmem:[%s1668_s1 + $0x278] sm:$0xff]  ;;  %v1150_v22 = vcombine.low %v105_v11, %v109_v12 }
  0x4b   :  { %796 = vmatprep.subr.bf16.mxu0 %v1095_v23  ;;  %837 = vmatprep.subr.bf16.mxu1 %v1097_v24  ;;  %v1152_v23 = vcombine.low %v106_v13, %v110_v14  ;;  %v1143_v24 = vcombine.high %v97_v19, %v101_v51  ;;  %v1145_v25 = vcombine.high %v98_v20, %v102_v21 }
  0x4e   :  { %797 = vmatpush1.bf16.msra.mxu0 %v1094_v29  ;;  %838 = vmatpush1.bf16.msra.mxu1 %v1096_v30  ;;  %v94_v29 = vld [vmem:[%s1668_s1 + $0x238] sm:$0xff]  ;;  %v1142_v30 = vcombine.low %v97_v19, %v101_v51 }
  0x4f   :  { %798 = vmatprep.subr.bf16.mxu0 %v1087_v31  ;;  %839 = vmatprep.subr.bf16.mxu1 %v1089_v32  ;;  %v1144_v31 = vcombine.low %v98_v20, %v102_v21  ;;  %v1135_v32 = vcombine.high %v89_v26, %v93_v27  ;;  %v1137_v33 = vcombine.high %v90_v28, %v94_v29  ;;  %v1209_v20 = vmov 0  }
  0x50   :  { %v1136_v35 = vcombine.low %v90_v28, %v94_v29  ;;  %1195 = vset.pattern.permute.xlu1 %v1209_v20  ;;  %1196 = vset.pattern.permute.xlu0 %v1209_v20  ;;  %v961_v29 = vld [vmem:[%s1671_s3] sm:$0xff] }
  0x52   :  { %799 = vmatpush1.bf16.msra.mxu0 %v1086_v37  ;;  %840 = vmatpush1.bf16.msra.mxu1 %v1088_v38 }
  0x53   :  { %800 = vmatprep.subr.bf16.mxu0 %v1079_v39  ;;  %841 = vmatprep.subr.bf16.mxu1 %v1081_v40 }
  0x56   :  { %801 = vmatpush1.bf16.msra.mxu0 %v1078_v45  ;;  %842 = vmatpush1.bf16.msra.mxu1 %v1080_v46 }
  0x57   :  { %802 = vmatprep.subr.bf16.mxu0 %v1071_v47  ;;  %843 = vmatprep.subr.bf16.mxu1 %v1073_v49 }
  0x5a   :  { %803 = vmatpush1.bf16.msra.mxu0 %v1070_v53  ;;  %844 = vmatpush1.bf16.msra.mxu1 %v1072_v54 }
  0x5b   :  { %1182 = vmatprep.subr.msk.bf16.mxu0 %vm681_vm1, %v1175_v55  ;;  %1184 = vmatprep.subr.msk.bf16.mxu1 %vm681_vm1, %v1177_v57 }
  0x5e   :  { %809 = vmatpush2.bf16.msra.mxu0 %v695_v0  ;;  %850 = vmatpush2.bf16.msra.mxu1 %v701_v2 }
  0x5f   :  { %810 = vmatprep.subr.bf16.mxu0 %v1167_v1  ;;  %851 = vmatprep.subr.bf16.mxu1 %v1169_v48 }
  0x62   :  { %811 = vmatpush2.bf16.msra.mxu0 %v1166_v7  ;;  %852 = vmatpush2.bf16.msra.mxu1 %v1168_v8 }
  0x63   :  { %812 = vmatprep.subr.bf16.mxu0 %v1159_v9  ;;  %853 = vmatprep.subr.bf16.mxu1 %v1161_v10 }
  0x66   :  { %813 = vmatpush2.bf16.msra.mxu0 %v1158_v15  ;;  %854 = vmatpush2.bf16.msra.mxu1 %v1160_v16 }
  0x67   :  { %814 = vmatprep.subr.bf16.mxu0 %v1151_v17  ;;  %855 = vmatprep.subr.bf16.mxu1 %v1153_v18 }
  0x6a   :  { %815 = vmatpush2.bf16.msra.mxu0 %v1150_v22  ;;  %856 = vmatpush2.bf16.msra.mxu1 %v1152_v23 }
  0x6b   :  { %816 = vmatprep.subr.bf16.mxu0 %v1143_v24  ;;  %857 = vmatprep.subr.bf16.mxu1 %v1145_v25  ;;  %v959_v25 = vld [vmem:[%s1670_s2] sm:$0xff] }
  0x6e   :  { %817 = vmatpush2.bf16.msra.mxu0 %v1142_v30  ;;  %858 = vmatpush2.bf16.msra.mxu1 %v1144_v31 }
  0x6f   :  { %818 = vmatprep.subr.bf16.mxu0 %v1135_v32  ;;  %859 = vmatprep.subr.bf16.mxu1 %v1137_v33  ;;  %v1007_v33 = vstv %s1672_s4 }
  0x72   :  { %819 = vmatpush2.bf16.msra.mxu0 %v1134_v34  ;;  %860 = vmatpush2.bf16.msra.mxu1 %v1136_v35 }
  0x75   :  { %821 = vmatmul.mubr.bf16.vlgmr.msra.gmra.mxu0 %v1439_v60  ;;  %862 = vmatmul.mubr.bf16.vlgmr.msra.gmra.mxu1 %v1439_v60 }
  0xfd   :  { %v1597_v36 = vpop.f32.mrf.mxu0  ;;  %v1599_v37 = vpop.f32.mrf.mxu1 }
  0xff   :  { %v1601_v38 = vpop.f32.mrf.mxu0  ;;  %v1603_v39 = vpop.f32.mrf.mxu1 }
 0x100   :  { %v878_v44 = vadd.f32 %v1601_v38, %v1597_v36 }
 0x101   :  { %v744_v40 = vpop.f32.mrf.mxu0  ;;  %v785_v41 = vpop.f32.mrf.mxu1 }
 0x102   :  { %v879_v45 = vadd.f32 %v878_v44, %v1599_v37 }
 0x103   :  { %v745_v42 = vpop.f32.mrf.mxu0  ;;  %v786_v43 = vpop.f32.mrf.mxu1 }
 0x104   :  { %v880_v46 = vadd.f32 %v879_v45, %v1603_v39 }
 0x135   :  { %v1609_v60 = vpop.f32.mrf.mxu0  ;;  %v1612_v49 = vpop.f32.mrf.mxu1 }
 0x136   :  { %v881_v47 = vadd.f32 %v880_v46, %v1609_v60 }
 0x137   :  { %v1614_v50 = vpop.f32.mrf.mxu0  ;;  %v1617_v53 = vpop.f32.mrf.mxu1 }
 0x138   :  { %v882_v52 = vadd.f32 %v881_v47, %v1614_v50 }
 0x139   :  { %v826_v54 = vpop.f32.mrf.mxu0  ;;  %v867_v55 = vpop.f32.mrf.mxu1 }
 0x13a   :  { %v883_v56 = vadd.f32 %v882_v52, %v1612_v49 }
 0x13b   :  { %v827_v57 = vpop.f32.mrf.mxu0  ;;  %v868_v58 = vpop.f32.mrf.mxu1 }
 0x13c   :  { %v884_v59 = vadd.f32 %v883_v56, %v1617_v53 }
 0x13e   :  { %885 = vadd.xlane.f32.xlu0 %v884_v59 }
 0x1c7   :  { %v886_v61 = vpop.xlane.xlu0 %885 }
 0x1c8   :  { %v888_v62 = vmul.f32 0.0009765625, %v886_v61 }
 0x1ca   :  { %v889_v63 = vsub.f32 %v1597_v36, %v888_v62  ;;  %v890_v0 = vsub.f32 %v1601_v38, %v888_v62  ;;  %v891_v1 = vsub.f32 %v1599_v37, %v888_v62  ;;  %919 = vst.msk [vmem:[#allocation3] sm:$0xff] %vm918_vm2, %v888_v62  ;;  %v892_v2 = vsub.f32 %v1603_v39, %v888_v62 }
 0x1cb   :  { %v893_v4 = vsub.f32 %v1609_v60, %v888_v62  ;;  %v894_v7 = vsub.f32 %v1614_v50, %v888_v62  ;;  %v895_v10 = vsub.f32 %v1612_v49, %v888_v62  ;;  %v896_v13 = vsub.f32 %v1617_v53, %v888_v62 }
 0x1cc   :  { %v897_v48 = vmul.f32 %v889_v63, %v889_v63  ;;  %v898_v3 = vmul.f32 %v890_v0, %v890_v0  ;;  %v899_v5 = vmul.f32 %v891_v1, %v891_v1  ;;  %v900_v8 = vmul.f32 %v892_v2, %v892_v2 }
 0x1cd   :  { %v901_v11 = vmul.f32 %v893_v4, %v893_v4  ;;  %v902_v14 = vmul.f32 %v894_v7, %v894_v7  ;;  %v903_v16 = vmul.f32 %v895_v10, %v895_v10  ;;  %v904_v18 = vmul.f32 %v896_v13, %v896_v13 }
 0x1ce   :  { %v905_v6 = vadd.f32 %v898_v3, %v897_v48 }
 0x1d0   :  { %v906_v9 = vadd.f32 %v905_v6, %v899_v5 }
 0x1d1   :  { %v954_v28 = vld [vmem:[#allocation3] sm:$0xff] }
 0x1d2   :  { %v907_v12 = vadd.f32 %v906_v9, %v900_v8 }
 0x1d4   :  { %v908_v15 = vadd.f32 %v907_v12, %v901_v11 }
 0x1d6   :  { %v909_v17 = vadd.f32 %v908_v15, %v902_v14 }
 0x1d8   :  { %v910_v19 = vadd.f32 %v909_v17, %v903_v16 }
 0x1da   :  { %v911_v51 = vadd.f32 %v910_v19, %v904_v18 }
 0x1dc   :  { %912 = vadd.xlane.f32.xlu0 %v911_v51 }
 0x265   :  { %v913_v21 = vpop.xlane.xlu0 %912 }
 0x266   :  { %920 = vst.msk [vmem:[#allocation4] sm:$0xff] %vm918_vm2, %v913_v21 }
 0x26d   :  { %v955_v22 = vld [vmem:[#allocation4] sm:$0xff] }
 0x26e   :  { %v956_v23 = vmul.f32 0.0009765625, %v955_v22 }
 0x270   :  { %v957_v24 = vadd.f32 1e-05, %v956_v23 }
 0x272   :  { %1207 = vrsqrt.f32 %v957_v24 }
 0x27f   :  { %v1208_v26 = vpop.eup %1207 }
 0x280   :  { %v960_v27 = vmul.f32 %v1208_v26, %v959_v25 }
 0x282   :  { %975 = vperm.xlu1 %1195, %v960_v27   ;;  %v962_v30 = vmul.f32 %v960_v27, %v954_v28 }
 0x284   :  { %v963_v31 = vsub.f32 %v961_v29, %v962_v30 }
 0x286   :  { %988 = vperm.xlu1 %1195, %v963_v31  }
 0x2fd   :  { %v976_v32 = vpop.permute.xlu1 %975 }
 0x2fe   :  { %v978_v34 = vmul.f32 %v976_v32, %v1597_v36  ;;  %v979_v35 = vmul.f32 %v976_v32, %v1601_v38  ;;  %v980_v40 = vmul.f32 %v976_v32, %v1599_v37  ;;  %v981_v41 = vmul.f32 %v976_v32, %v1603_v39 }
 0x2ff   :  { %v982_v42 = vmul.f32 %v976_v32, %v1609_v60  ;;  %v983_v43 = vmul.f32 %v976_v32, %v1614_v50  ;;  %v984_v44 = vmul.f32 %v976_v32, %v1612_v49  ;;  %v985_v45 = vmul.f32 %v976_v32, %v1617_v53 }
 0x301   :  { %v989_v46 = vpop.permute.xlu1 %988 }
 0x302   :  { %v991_v47 = vadd.f32 %v989_v46, %v978_v34  ;;  %v992_v52 = vadd.f32 %v989_v46, %v979_v35  ;;  %v993_v54 = vadd.f32 %v989_v46, %v980_v40  ;;  %v994_v55 = vadd.f32 %v989_v46, %v981_v41 }
 0x303   :  { %v995_v36 = vadd.f32 %v989_v46, %v982_v42  ;;  %v996_v56 = vadd.f32 %v989_v46, %v983_v43  ;;  %v997_v38 = vadd.f32 %v989_v46, %v984_v44  ;;  %v998_v57 = vadd.f32 %v989_v46, %v985_v45 }
 0x304   :  { %vm999_vm3 = vcmp.ge.f32.partialorder %v991_v47, 0.0  ;;  %vm1000_vm4 = vcmp.ge.f32.partialorder %v992_v52, 0.0  ;;  %vm1001_vm5 = vcmp.ge.f32.partialorder %v993_v54, 0.0  ;;  %vm1002_vm6 = vcmp.ge.f32.partialorder %v994_v55, 0.0 }
 0x305   :  { %vm1003_vm7 = vcmp.ge.f32.partialorder %v995_v36, 0.0  ;;  %vm1004_vm8 = vcmp.ge.f32.partialorder %v996_v56, 0.0  ;;  %vm1005_vm9 = vcmp.ge.f32.partialorder %v997_v38, 0.0  ;;  %vm1006_vm10 = vcmp.ge.f32.partialorder %v998_v57, 0.0 }
 0x306   :  { %v1008_v37 = vmul.f32 %v1007_v33, %v991_v47  ;;  %v1009_v39 = vmul.f32 %v1007_v33, %v992_v52  ;;  %v1010_v60 = vmul.f32 %v1007_v33, %v993_v54  ;;  %v1011_v49 = vmul.f32 %v1007_v33, %v994_v55 }
 0x307   :  { %v1012_v50 = vmul.f32 %v1007_v33, %v995_v36  ;;  %v1013_v53 = vmul.f32 %v1007_v33, %v996_v56  ;;  %v1014_v58 = vmul.f32 %v1007_v33, %v997_v38  ;;  %v1015_v59 = vmul.f32 %v1007_v33, %v998_v57 }
 0x308   :  { %v1016_v61 = vsel %vm999_vm3, %v991_v47, %v1008_v37  ;;  %v1017_v62 = vsel %vm1000_vm4, %v992_v52, %v1009_v39  ;;  %v1018_v63 = vsel %vm1001_vm5, %v993_v54, %v1010_v60  ;;  %v1019_v0 = vsel %vm1002_vm6, %v994_v55, %v1011_v49 }
 0x309   :  { %v1020_v1 = vsel %vm1003_vm7, %v995_v36, %v1012_v50  ;;  %v1021_v2 = vsel %vm1004_vm8, %v996_v56, %v1013_v53  ;;  %v1022_v48 = vsel %vm1005_vm9, %v997_v38, %v1014_v58  ;;  %v1023_v3 = vsel %vm1006_vm10, %v998_v57, %v1015_v59 }
 0x30a   :  { %v1190_v4 = vpack.c.bf16 %v1017_v62, %v1016_v61  ;;  %v1191_v5 = vpack.c.bf16 %v1019_v0, %v1018_v63  ;;  %v1192_v6 = vpack.c.bf16 %v1021_v2, %v1020_v1  ;;  %v1193_v7 = vpack.c.bf16 %v1023_v3, %v1022_v48 }
 0x30c   :  { %1056 = vst [vmem:[%s1673_s5] sm:$0xff] %v1190_v4  ;;  %1057 = vst [vmem:[%s1673_s5 + $0x8] sm:$0xff] %v1191_v5 }
 0x30d   :  { %1058 = vst [vmem:[%s1673_s5 + $0x10] sm:$0xff] %v1192_v6  ;;  %1059 = vst [vmem:[%s1673_s5 + $0x18] sm:$0xff] %v1193_v7 }

// kernel: extract_feature_forward.5
= control target key start
LH: loop header
LB: loop body
LE: loop exit
PB: predicated region body
PF: predicated region fallthrough
CT: control target
= control target key end

     0   :  { %s212_s0 = inlined_call_operand.vmem [shape: bf16[27,8,128], index: 0, kind: input, shape index: {}]   ;;  %s213_s1 = inlined_call_operand.vmem [shape: f32[8,128], index: 1, kind: output, shape index: {}]  }
   0x1   :  { %v94_v0 = vld [vmem:[%s212_s0] sm:$0xff]   ;;  %v145_v1 = vld [vmem:[%s212_s0 + $0x8] sm:$0xff]   ;;  %v146_v2 = vld [vmem:[%s212_s0 + $0x10] sm:$0xff]  }
   0x2   :  { %v147_v3 = vld [vmem:[%s212_s0 + $0x18] sm:$0xff]   ;;  %v148_v4 = vld [vmem:[%s212_s0 + $0x20] sm:$0xff]   ;;  %v95_v5 = vunpack.c.l.bf16 %v94_v0  ;;  %v96_v6 = vunpack.c.h.bf16 %v94_v0  ;;  %v99_v7 = vunpack.c.l.bf16 %v145_v1  ;;  %v103_v8 = vunpack.c.l.bf16 %v146_v2  ;;  %v149_v9 = vld [vmem:[%s212_s0 + $0x28] sm:$0xff]  }
   0x3   :  { %v100_v10 = vunpack.c.h.bf16 %v145_v1  ;;  %v104_v11 = vunpack.c.h.bf16 %v146_v2  ;;  %v107_v12 = vunpack.c.l.bf16 %v147_v3  ;;  %v108_v13 = vunpack.c.h.bf16 %v147_v3  ;;  %v150_v14 = vld [vmem:[%s212_s0 + $0x30] sm:$0xff]   ;;  %v151_v15 = vld [vmem:[%s212_s0 + $0x38] sm:$0xff]   ;;  %v152_v20 = vld [vmem:[%s212_s0 + $0x40] sm:$0xff]  }
   0x4   :  { %v111_v16 = vunpack.c.l.bf16 %v148_v4  ;;  %v112_v17 = vunpack.c.h.bf16 %v148_v4  ;;  %v115_v18 = vunpack.c.l.bf16 %v149_v9  ;;  %v116_v19 = vunpack.c.h.bf16 %v149_v9  ;;  %v153_v21 = vld [vmem:[%s212_s0 + $0x48] sm:$0xff]   ;;  %v154_v27 = vld [vmem:[%s212_s0 + $0x50] sm:$0xff]   ;;  %v155_v28 = vld [vmem:[%s212_s0 + $0x58] sm:$0xff]  }
   0x5   :  { %v119_v22 = vunpack.c.l.bf16 %v150_v14  ;;  %v120_v23 = vunpack.c.h.bf16 %v150_v14  ;;  %v123_v24 = vunpack.c.l.bf16 %v151_v15  ;;  %v62_v25 = vmax.f32 %v95_v5, %v103_v8  ;;  %v156_v37 = vld [vmem:[%s212_s0 + $0x60] sm:$0xff]   ;;  %v34_v44 = vld [vmem:[%s212_s0 + $0x68] sm:$0xf] }
   0x6   :  { %v124_v26 = vunpack.c.h.bf16 %v151_v15  ;;  %v63_v29 = vmax.f32 %v96_v6, %v104_v11  ;;  %v64_v30 = vmax.f32 %v99_v7, %v107_v12  ;;  %v65_v31 = vmax.f32 %v100_v10, %v108_v13 }
   0x7   :  { %v127_v32 = vunpack.c.l.bf16 %v152_v20  ;;  %v128_v33 = vunpack.c.h.bf16 %v152_v20  ;;  %v131_v34 = vunpack.c.l.bf16 %v153_v21  ;;  %v66_v35 = vmax.f32 %v62_v25, %v111_v16 }
   0x8   :  { %v132_v36 = vunpack.c.h.bf16 %v153_v21  ;;  %v67_v38 = vmax.f32 %v63_v29, %v112_v17  ;;  %v68_v39 = vmax.f32 %v64_v30, %v115_v18  ;;  %v69_v40 = vmax.f32 %v65_v31, %v116_v19 }
   0x9   :  { %v135_v41 = vunpack.c.l.bf16 %v154_v27  ;;  %v136_v42 = vunpack.c.h.bf16 %v154_v27  ;;  %v139_v43 = vunpack.c.l.bf16 %v155_v28  ;;  %v70_v45 = vmax.f32 %v66_v35, %v119_v22 }
   0xa   :  { %v140_v46 = vunpack.c.h.bf16 %v155_v28  ;;  %v71_v47 = vmax.f32 %v67_v38, %v120_v23  ;;  %v72_v48 = vmax.f32 %v68_v39, %v123_v24  ;;  %v73_v49 = vmax.f32 %v69_v40, %v124_v26 }
   0xb   :  { %v143_v50 = vunpack.c.l.bf16 %v156_v37  ;;  %v144_v51 = vunpack.c.h.bf16 %v156_v37  ;;  %v74_v52 = vmax.f32 %v70_v45, %v127_v32  ;;  %v61_v53 = vunpack.c.l.bf16 %v34_v44 }
   0xc   :  { %v75_v54 = vmax.f32 %v71_v47, %v128_v33  ;;  %v76_v55 = vmax.f32 %v72_v48, %v131_v34  ;;  %v77_v56 = vmax.f32 %v73_v49, %v132_v36 }
   0xd   :  { %v78_v57 = vmax.f32 %v74_v52, %v135_v41 }
   0xe   :  { %v79_v58 = vmax.f32 %v75_v54, %v136_v42  ;;  %v80_v59 = vmax.f32 %v76_v55, %v139_v43  ;;  %v81_v60 = vmax.f32 %v77_v56, %v140_v46 }
   0xf   :  { %v82_v61 = vmax.f32 %v78_v57, %v143_v50 }
  0x10   :  { %v83_v62 = vmax.f32 %v79_v58, %v144_v51  ;;  %v84_v63 = vmax.f32 %v80_v59, %v61_v53 }
  0x12   :  { %v85_v0 = vmax.f32 %v82_v61, %v83_v62  ;;  %v86_v1 = vmax.f32 %v84_v63, %v81_v60 }
  0x14   :  { %v87_v2 = vmax.f32 %v85_v0, %v86_v1 }
  0x16   :  { %88 = vst [vmem:[%s213_s1] sm:$0xff] %v87_v2 }

</bundles_post_ra>
